<compile_context>
chip_gen: v7x
topology: tpu7x:2x2x1
jax: 0.10.0
libtpu: 0.0.40
codegen_flags: <defaults>
</compile_context>

<pallas_src>
import functools

import jax
import jax.numpy as jnp
from jax.experimental import pallas as pl
from jax.experimental.pallas import tpu as pltpu


# ---------------------------------------------------------------------------
# Pallas kernel: fused tap-gather + 4 MXU matmuls + GaussActivation + MaskUpdate
# ---------------------------------------------------------------------------
def _rev_mask_conv_kernel(params_ref, w_ref, planes_ref, activ_ref, update_ref,
                          a_scr, u_scr, *, th, wo, wp2):
    """One (batch, row-band) grid step.

    params_ref : SMEM [5]                                  [a, mu, sigma1, sigma2, alpha]
    w_ref      : VMEM [4, Cout, 4*Cin] bf16                2x2 parity-conv weights (resident)
    planes_ref : VMEM [1, 1, 4*Cin, (TH+2)*(Wo+1)] bf16    flattened parity-plane band (+halo)
    activ_ref  : VMEM [1, Cout, TH, Wo]                    output block (bf16)
    update_ref : VMEM [1, Cout, TH, Wo]                    output block (bf16)
    a_scr/u_scr: VMEM [Cout, TH*(Wo+1)] bf16               padded-flat results (scratch)
    """
    a = params_ref[0]
    mu = params_ref[1]
    sigma1 = params_ref[2]
    sigma2 = params_ref[3]
    alpha = params_ref[4]

    m = th * wp2  # padded-flat positions covered by this band (row stride Wo+1)

    # conv4x4/s2 == 4 taps of a 2x2/s1 conv over the parity planes; each tap is a
    # contiguous lane-window of the flattened band -> 4 MXU matmuls, f32 accumulation.
    feats = None
    for t in range(4):
        dy, dx = t // 2, t % 2
        shift = dy * wp2 + dx
        tap = planes_ref[0, 0, :, pl.ds(shift, m)]                       # [4*Cin, M] bf16
        part = jnp.dot(w_ref[t], tap, preferred_element_type=jnp.float32)
        feats = part if feats is None else feats + part                  # [Cout, M] f32

    # GaussActivation fused to a single exp per element (all f32; the exp argument is
    # <= 0 so even the halo-column garbage positions stay finite).
    below = feats < mu
    d = feats - mu
    d2 = d * d
    sig = jnp.where(below, sigma1, sigma2)
    scale = jnp.where(below, a, a - 1.0)
    offset = jnp.where(below, 0.0, 1.0)
    a_scr[...] = (offset + scale * jnp.exp(-sig * d2)).astype(a_scr.dtype)

    # MaskUpdate: relu(x) ** alpha via guarded exp(alpha*log(x)) (x == 0 -> 0 preserved).
    r = jnp.maximum(feats, 0.0)
    pos = r > 0.0
    safe = jnp.where(pos, r, 1.0)
    u_scr[...] = jnp.where(pos, jnp.exp(alpha * jnp.log(safe)), 0.0).astype(u_scr.dtype)

    # Strip the per-row halo column: copy TH lane-dense rows straight into the NCHW blocks.
    for rr in range(th):
        off = rr * wp2
        activ_ref[0, :, rr, :] = a_scr[:, pl.ds(off, wo)]
        update_ref[0, :, rr, :] = u_scr[:, pl.ds(off, wo)]


# ---------------------------------------------------------------------------
# Row-band selection: biggest band that fits a conservative VMEM budget.
# ---------------------------------------------------------------------------
def _pick_band_rows(ho, wo, cout, c4, max_rows=64, vmem_budget=10 * 1024 * 1024):
    """Largest TH that is either Ho itself or a multiple-of-8 divisor of Ho (out BlockSpec
    needs TH % 8 == 0 unless TH equals the full extent) and fits the VMEM budget."""
    wp2 = wo + 1

    def fits(th):
        m = th * wp2
        bytes_est = (cout * m * 4                       # f32 feats value
                     + 2 * cout * m * 2                 # two bf16 scratches
                     + 2 * 2 * c4 * (m + 2 * wp2)       # planes band (bf16, double-buffered)
                     + 2 * 2 * 2 * cout * th * wo)      # two bf16 out blocks, double-buffered
        return bytes_est <= vmem_budget

    if ho <= max_rows and fits(ho):
        return ho
    best = None
    th = 8
    while th <= min(ho - 1, max_rows):
        if ho % th == 0 and fits(th):
            best = th
        th += 8
    # TODO(synk): if no multiple-of-8 divisor fits (huge/awkward Ho), fall back to a single
    # whole-image band; a halo-DMA row tiling (manual double-buffer) would bound VMEM there.
    return best if best is not None else ho


# ---------------------------------------------------------------------------
# Wrapper: clamp params, space-to-depth the padded input, band it, call the kernel.
# ---------------------------------------------------------------------------
@functools.partial(jax.jit,
                   static_argnames=("kernel_size", "stride", "padding", "out_dtype"))
def reverse_mask_conv(input_masks, weight, a, mu, sigma1, sigma2, alpha,
                      kernel_size=4, stride=2, padding=1, out_dtype=jnp.bfloat16):
    """Forward of ReverseMaskConv.  input_masks: [N, Cin, H, W] f32, weight: [Cout, Cin, 4, 4]."""
    assert kernel_size == 4 and stride == 2 and padding == 1, "only the module's 4/2/1 config"
    N, Cin, H, W = input_masks.shape
    Cout = weight.shape[0]
    assert H % 2 == 0 and W % 2 == 0, "even spatial dims expected (stride-2 conv)"
    Ho, Wo = H // 2, W // 2
    Wp2 = Wo + 1
    C4 = 4 * Cin

    # Parameter clamping (GaussActivation does this every forward).
    a_c = jnp.clip(a, 1.01, 6.0)
    mu_c = jnp.clip(mu, 0.1, 3.0)
    s1_c = jnp.clip(sigma1, 0.5, 2.0)
    s2_c = jnp.clip(sigma2, 0.5, 2.0)
    params = jnp.stack([a_c, mu_c, s1_c, s2_c, jnp.float32(alpha)]).astype(jnp.float32)

    # Space-to-depth of the zero-padded input (bf16 to halve HBM traffic of this pass):
    #   planes[n, (py*2+px)*Cin + c, r, s] = xpad[n, c, 2r+py, 2s+px]
    xb = input_masks.astype(jnp.bfloat16)
    xpad = jnp.pad(xb, ((0, 0), (0, 0), (1, 1), (1, 1)))
    planes = (xpad.reshape(N, Cin, Ho + 1, 2, Wp2, 2)
                  .transpose(0, 3, 5, 1, 2, 4)
                  .reshape(N, C4, Ho + 1, Wp2))
    # Flatten spatial (row stride Wp2) and append one zero plane-row so every band can read
    # its (TH+2)-row halo without going out of bounds.
    pf = planes.reshape(N, C4, (Ho + 1) * Wp2)
    pf = jnp.pad(pf, ((0, 0), (0, 0), (0, Wp2)))              # -> [N, C4, (Ho+2)*Wp2]

    TH = _pick_band_rows(Ho, Wo, Cout, C4)
    assert Ho % TH == 0
    nb = Ho // TH
    Lb = (TH + 2) * Wp2
    planes_banded = jnp.stack(
        [pf[:, :, b * TH * Wp2: b * TH * Wp2 + Lb] for b in range(nb)], axis=1)
    # planes_banded: [N, nb, C4, Lb] bf16 (adjacent bands duplicate 2 halo rows -> negligible)

    # Weights for the parity conv: W2[dy*2+dx, co, (py*2+px)*Cin + c] = w[co, c, 2dy+py, 2dx+px]
    w2 = (weight.reshape(Cout, Cin, 2, 2, 2, 2)
                .transpose(2, 4, 0, 3, 5, 1)
                .reshape(4, Cout, C4)
                .astype(jnp.bfloat16))

    M = TH * Wp2
    out_sds = jax.ShapeDtypeStruct((N, Cout, Ho, Wo), out_dtype)

    cost = pl.CostEstimate(
        flops=2 * N * nb * M * (4 * C4) * Cout,
        transcendentals=3 * N * nb * M * Cout,
        bytes_accessed=planes_banded.size * 2 + w2.size * 2 + 2 * N * Cout * Ho * Wo * 2,
    )

    kernel = functools.partial(_rev_mask_conv_kernel, th=TH, wo=Wo, wp2=Wp2)

    activ, update = pl.pallas_call(
        kernel,
        out_shape=(out_sds, out_sds),
        grid_spec=pltpu.PrefetchScalarGridSpec(
            num_scalar_prefetch=1,                                   # params -> SMEM
            grid=(N, nb),
            in_specs=[
                pl.BlockSpec((4, Cout, C4), lambda n, b, p: (0, 0, 0)),       # tiny, resident
                pl.BlockSpec((1, 1, C4, Lb), lambda n, b, p: (n, b, 0, 0)),   # plane band
            ],
            out_specs=(
                pl.BlockSpec((1, Cout, TH, Wo), lambda n, b, p: (n, 0, b, 0)),
                pl.BlockSpec((1, Cout, TH, Wo), lambda n, b, p: (n, 0, b, 0)),
            ),
            scratch_shapes=[
                pltpu.VMEM((Cout, M), jnp.bfloat16),
                pltpu.VMEM((Cout, M), jnp.bfloat16),
            ],
        ),
        compiler_params=pltpu.CompilerParams(
            dimension_semantics=("parallel", "parallel")),
        cost_estimate=cost,
    )(params, w2, planes_banded)

    return activ, update


# ---------------------------------------------------------------------------
# Pure-JAX reference (for correctness check)
# ---------------------------------------------------------------------------
def _reference(input_masks, weight, a, mu, sigma1, sigma2, alpha, in_dtype=jnp.float32):
    feats = jax.lax.conv_general_dilated(
        input_masks.astype(in_dtype), weight.astype(in_dtype),
        window_strides=(2, 2), padding=((1, 1), (1, 1)),
        dimension_numbers=("NCHW", "OIHW", "NCHW"),
        preferred_element_type=jnp.float32)
    a_c, mu_c = jnp.clip(a, 1.01, 6.0), jnp.clip(mu, 0.1, 3.0)
    s1_c, s2_c = jnp.clip(sigma1, 0.5, 2.0), jnp.clip(sigma2, 0.5, 2.0)
    d2 = (feats - mu_c) ** 2
    activ = jnp.where(feats < mu_c,
                      a_c * jnp.exp(-s1_c * d2),
                      1.0 + (a_c - 1.0) * jnp.exp(-s2_c * d2))
    update = jnp.power(jnp.maximum(feats, 0.0), alpha)
    return activ, update


if __name__ == "__main__":
    key = jax.random.PRNGKey(0)
    k_w, k_x = jax.random.split(key)

    N, Cin, Cout, H, W = 2, 4, 8, 16, 16

    # Deterministic "weights_init('gaussian')": N(0, 0.02), no bias (convBias=False).
    weight = 0.02 * jax.random.normal(k_w, (Cout, Cin, 4, 4), dtype=jnp.float32)
    # Input mask map in [0, 1].
    x = jax.random.uniform(k_x, (N, Cin, H, W), dtype=jnp.float32)

    a = jnp.float32(1.1)
    mu = jnp.float32(1.0)
    sigma1 = jnp.float32(0.5)
    sigma2 = jnp.float32(0.5)
    alpha = 0.8

    activ, update = reverse_mask_conv(x, weight, a, mu, sigma1, sigma2, alpha)
    jax.block_until_ready((activ, update))

    assert activ.shape == (N, Cout, H // 2, W // 2)
    assert update.shape == (N, Cout, H // 2, W // 2)

    activ32 = activ.astype(jnp.float32)
    update32 = update.astype(jnp.float32)

    # Tight check: reference conv also fed bf16 inputs (f32 accumulate) and rounded to bf16
    # (same math path; tolerance covers a 1-ulp bf16 rounding disagreement).
    ref_a_bf, ref_u_bf = _reference(x, weight, a, mu, sigma1, sigma2, alpha,
                                    in_dtype=jnp.bfloat16)
    ref_a_bf = ref_a_bf.astype(jnp.bfloat16).astype(jnp.float32)
    ref_u_bf = ref_u_bf.astype(jnp.bfloat16).astype(jnp.float32)
    assert jnp.allclose(activ32, ref_a_bf, atol=2e-2, rtol=2e-2)
    assert jnp.allclose(update32, ref_u_bf, atol=2e-2, rtol=2e-2)

    # Loose semantic check vs the full-f32 module math (covers bf16 input/output rounding).
    ref_a_32, ref_u_32 = _reference(x, weight, a, mu, sigma1, sigma2, alpha,
                                    in_dtype=jnp.float32)
    assert jnp.allclose(activ32, ref_a_32, atol=5e-2, rtol=5e-2)
    assert jnp.allclose(update32, ref_u_32, atol=5e-2, rtol=5e-2)

    print("KERNEL_OK")
</pallas_src>

<mosaic_0001>
module attributes {stable_mosaic.version = 11 : i64} {
  func.func @_rev_mask_conv_kernel(%arg0: i32, %arg1: i32, %arg2: memref<5xf32, #tpu.memory_space<smem>>, %arg3: memref<4x8x16xbf16, #tpu.memory_space<vmem>>, %arg4: memref<1x1x16x90xbf16, #tpu.memory_space<vmem>>, %arg5: memref<1x8x8x8xbf16, #tpu.memory_space<vmem>>, %arg6: memref<1x8x8x8xbf16, #tpu.memory_space<vmem>>, %arg7: memref<8x72xbf16, #tpu.memory_space<vmem>>, %arg8: memref<8x72xbf16, #tpu.memory_space<vmem>>) attributes {dimension_semantics = [#tpu.dimension_semantics<parallel>, #tpu.dimension_semantics<parallel>], iteration_bounds = array<i64: 2, 1>, scalar_prefetch = 1 : i64, scratch_operands = 2 : i64, tpu.core_type = #tpu.core_type<tc>, window_params = [{pipeline_mode = #tpu.pipeline_mode<synchronous>, transform_indices = @transform_0, window_bounds = array<i64: 4, 8, 16>}, {transform_indices = @transform_1, window_bounds = array<i64: 1, 1, 16, 90>}, {transform_indices = @transform_2, window_bounds = array<i64: 1, 8, 8, 8>}, {transform_indices = @transform_3, window_bounds = array<i64: 1, 8, 8, 8>}]} {
    %c0 = arith.constant 0 : index
    %0 = memref.load %arg2[%c0] : memref<5xf32, #tpu.memory_space<smem>>
    %c1 = arith.constant 1 : index
    %1 = memref.load %arg2[%c1] : memref<5xf32, #tpu.memory_space<smem>>
    %c2 = arith.constant 2 : index
    %2 = memref.load %arg2[%c2] : memref<5xf32, #tpu.memory_space<smem>>
    %c3 = arith.constant 3 : index
    %3 = memref.load %arg2[%c3] : memref<5xf32, #tpu.memory_space<smem>>
    %c4 = arith.constant 4 : index
    %4 = memref.load %arg2[%c4] : memref<5xf32, #tpu.memory_space<smem>>
    %c0_0 = arith.constant 0 : index
    %c0_1 = arith.constant 0 : index
    %c0_2 = arith.constant 0 : index
    %c0_3 = arith.constant 0 : index
    %5 = vector.load %arg4[%c0_0, %c0_1, %c0_2, %c0_3] : memref<1x1x16x90xbf16, #tpu.memory_space<vmem>>, vector<1x1x16x72xbf16>
    %6 = vector.shape_cast %5 : vector<1x1x16x72xbf16> to vector<16x72xbf16>
    %c0_4 = arith.constant 0 : index
    %c0_5 = arith.constant 0 : index
    %c0_6 = arith.constant 0 : index
    %7 = vector.load %arg3[%c0_4, %c0_5, %c0_6] : memref<4x8x16xbf16, #tpu.memory_space<vmem>>, vector<1x8x16xbf16>
    %8 = vector.shape_cast %7 : vector<1x8x16xbf16> to vector<8x16xbf16>
    %cst = arith.constant dense<0.000000e+00> : vector<8x72xf32>
    %9 = tpu.matmul %8, %6, %cst {dimension_numbers = #tpu.dot_dimension_numbers<[1], [0], [0], [1], [0, 0, 1, 1], [], []>} : vector<8x16xbf16>, vector<16x72xbf16>, vector<8x72xf32> -> vector<8x72xf32>
    %c0_7 = arith.constant 0 : index
    %c0_8 = arith.constant 0 : index
    %c0_9 = arith.constant 0 : index
    %c1_10 = arith.constant 1 : index
    %10 = vector.load %arg4[%c0_7, %c0_8, %c0_9, %c1_10] : memref<1x1x16x90xbf16, #tpu.memory_space<vmem>>, vector<1x1x16x72xbf16>
    %11 = vector.shape_cast %10 : vector<1x1x16x72xbf16> to vector<16x72xbf16>
    %c1_11 = arith.constant 1 : index
    %c0_12 = arith.constant 0 : index
    %c0_13 = arith.constant 0 : index
    %12 = vector.load %arg3[%c1_11, %c0_12, %c0_13] : memref<4x8x16xbf16, #tpu.memory_space<vmem>>, vector<1x8x16xbf16>
    %13 = vector.shape_cast %12 : vector<1x8x16xbf16> to vector<8x16xbf16>
    %cst_14 = arith.constant dense<0.000000e+00> : vector<8x72xf32>
    %14 = tpu.matmul %13, %11, %cst_14 {dimension_numbers = #tpu.dot_dimension_numbers<[1], [0], [0], [1], [0, 0, 1, 1], [], []>} : vector<8x16xbf16>, vector<16x72xbf16>, vector<8x72xf32> -> vector<8x72xf32>
    %15 = arith.addf %9, %14 : vector<8x72xf32>
    %c0_15 = arith.constant 0 : index
    %c0_16 = arith.constant 0 : index
    %c0_17 = arith.constant 0 : index
    %c9 = arith.constant 9 : index
    %16 = vector.load %arg4[%c0_15, %c0_16, %c0_17, %c9] : memref<1x1x16x90xbf16, #tpu.memory_space<vmem>>, vector<1x1x16x72xbf16>
    %17 = vector.shape_cast %16 : vector<1x1x16x72xbf16> to vector<16x72xbf16>
    %c2_18 = arith.constant 2 : index
    %c0_19 = arith.constant 0 : index
    %c0_20 = arith.constant 0 : index
    %18 = vector.load %arg3[%c2_18, %c0_19, %c0_20] : memref<4x8x16xbf16, #tpu.memory_space<vmem>>, vector<1x8x16xbf16>
    %19 = vector.shape_cast %18 : vector<1x8x16xbf16> to vector<8x16xbf16>
    %cst_21 = arith.constant dense<0.000000e+00> : vector<8x72xf32>
    %20 = tpu.matmul %19, %17, %cst_21 {dimension_numbers = #tpu.dot_dimension_numbers<[1], [0], [0], [1], [0, 0, 1, 1], [], []>} : vector<8x16xbf16>, vector<16x72xbf16>, vector<8x72xf32> -> vector<8x72xf32>
    %21 = arith.addf %15, %20 : vector<8x72xf32>
    %c0_22 = arith.constant 0 : index
    %c0_23 = arith.constant 0 : index
    %c0_24 = arith.constant 0 : index
    %c10 = arith.constant 10 : index
    %22 = vector.load %arg4[%c0_22, %c0_23, %c0_24, %c10] : memref<1x1x16x90xbf16, #tpu.memory_space<vmem>>, vector<1x1x16x72xbf16>
    %23 = vector.shape_cast %22 : vector<1x1x16x72xbf16> to vector<16x72xbf16>
    %c3_25 = arith.constant 3 : index
    %c0_26 = arith.constant 0 : index
    %c0_27 = arith.constant 0 : index
    %24 = vector.load %arg3[%c3_25, %c0_26, %c0_27] : memref<4x8x16xbf16, #tpu.memory_space<vmem>>, vector<1x8x16xbf16>
    %25 = vector.shape_cast %24 : vector<1x8x16xbf16> to vector<8x16xbf16>
    %cst_28 = arith.constant dense<0.000000e+00> : vector<8x72xf32>
    %26 = tpu.matmul %25, %23, %cst_28 {dimension_numbers = #tpu.dot_dimension_numbers<[1], [0], [0], [1], [0, 0, 1, 1], [], []>} : vector<8x16xbf16>, vector<16x72xbf16>, vector<8x72xf32> -> vector<8x72xf32>
    %27 = arith.addf %21, %26 : vector<8x72xf32>
    %28 = vector.broadcast %1 : f32 to vector<8x72xf32>
    %29 = arith.cmpf olt, %27, %28 : vector<8x72xf32>
    %30 = vector.broadcast %1 : f32 to vector<8x72xf32>
    %31 = arith.subf %27, %30 : vector<8x72xf32>
    %32 = arith.mulf %31, %31 : vector<8x72xf32>
    %33 = vector.broadcast %2 : f32 to vector<8x72xf32>
    %34 = vector.broadcast %3 : f32 to vector<8x72xf32>
    %35 = arith.select %29, %33, %34 : vector<8x72xi1>, vector<8x72xf32>
    %cst_29 = arith.constant 1.000000e+00 : f32
    %36 = arith.subf %0, %cst_29 : f32
    %37 = vector.broadcast %0 : f32 to vector<8x72xf32>
    %38 = vector.broadcast %36 : f32 to vector<8x72xf32>
    %39 = arith.select %29, %37, %38 : vector<8x72xi1>, vector<8x72xf32>
    %cst_30 = arith.constant 0.000000e+00 : f32
    %cst_31 = arith.constant 1.000000e+00 : f32
    %40 = vector.broadcast %cst_30 : f32 to vector<8x72xf32>
    %41 = vector.broadcast %cst_31 : f32 to vector<8x72xf32>
    %42 = arith.select %29, %40, %41 : vector<8x72xi1>, vector<8x72xf32>
    %cst_32 = arith.constant 0.000000e+00 : f32
    %43 = vector.broadcast %cst_32 : f32 to vector<8x72xf32>
    %44 = arith.subf %43, %35 : vector<8x72xf32>
    %45 = arith.mulf %44, %32 : vector<8x72xf32>
    %46 = math.exp %45 : vector<8x72xf32>
    %47 = arith.mulf %39, %46 : vector<8x72xf32>
    %48 = arith.addf %42, %47 : vector<8x72xf32>
    %49 = arith.truncf %48 : vector<8x72xf32> to vector<8x72xbf16>
    %c0_33 = arith.constant 0 : index
    %c0_34 = arith.constant 0 : index
    %50 = vector.load %arg7[%c0_33, %c0_34] : memref<8x72xbf16, #tpu.memory_space<vmem>>, vector<8x72xbf16>
    tpu.vector_store %arg7[%c0_33, %c0_34], %49 {strides = array<i32>} : memref<8x72xbf16, #tpu.memory_space<vmem>>, vector<8x72xbf16>,
    %cst_35 = arith.constant 0.000000e+00 : f32
    %51 = vector.broadcast %cst_35 : f32 to vector<8x72xf32>
    %52 = arith.maximumf %27, %51 : vector<8x72xf32>
    %cst_36 = arith.constant 0.000000e+00 : f32
    %53 = vector.broadcast %cst_36 : f32 to vector<8x72xf32>
    %54 = arith.cmpf ogt, %52, %53 : vector<8x72xf32>
    %cst_37 = arith.constant 1.000000e+00 : f32
    %55 = vector.broadcast %cst_37 : f32 to vector<8x72xf32>
    %56 = arith.select %54, %52, %55 : vector<8x72xi1>, vector<8x72xf32>
    %57 = math.log %56 : vector<8x72xf32>
    %58 = vector.broadcast %4 : f32 to vector<8x72xf32>
    %59 = arith.mulf %58, %57 : vector<8x72xf32>
    %60 = math.exp %59 : vector<8x72xf32>
    %cst_38 = arith.constant 0.000000e+00 : f32
    %61 = vector.broadcast %cst_38 : f32 to vector<8x72xf32>
    %62 = arith.select %54, %60, %61 : vector<8x72xi1>, vector<8x72xf32>
    %63 = arith.truncf %62 : vector<8x72xf32> to vector<8x72xbf16>
    %c0_39 = arith.constant 0 : index
    %c0_40 = arith.constant 0 : index
    %64 = vector.load %arg8[%c0_39, %c0_40] : memref<8x72xbf16, #tpu.memory_space<vmem>>, vector<8x72xbf16>
    tpu.vector_store %arg8[%c0_39, %c0_40], %63 {strides = array<i32>} : memref<8x72xbf16, #tpu.memory_space<vmem>>, vector<8x72xbf16>,
    %c0_41 = arith.constant 0 : index
    %c0_42 = arith.constant 0 : index
    %65 = vector.load %arg7[%c0_41, %c0_42] : memref<8x72xbf16, #tpu.memory_space<vmem>>, vector<8x8xbf16>
    %c0_43 = arith.constant 0 : index
    %c0_44 = arith.constant 0 : index
    %c0_45 = arith.constant 0 : index
    %c0_46 = arith.constant 0 : index
    %66 = vector.load %arg5[%c0_43, %c0_44, %c0_45, %c0_46] : memref<1x8x8x8xbf16, #tpu.memory_space<vmem>>, vector<1x8x1x8xbf16>
    %67 = vector.shape_cast %66 : vector<1x8x1x8xbf16> to vector<8x8xbf16>
    %68 = vector.shape_cast %65 : vector<8x8xbf16> to vector<1x8x1x8xbf16>
    tpu.vector_store %arg5[%c0_43, %c0_44, %c0_45, %c0_46], %68 {strides = array<i32>} : memref<1x8x8x8xbf16, #tpu.memory_space<vmem>>, vector<1x8x1x8xbf16>,
    %c0_47 = arith.constant 0 : index
    %c0_48 = arith.constant 0 : index
    %69 = vector.load %arg8[%c0_47, %c0_48] : memref<8x72xbf16, #tpu.memory_space<vmem>>, vector<8x8xbf16>
    %c0_49 = arith.constant 0 : index
    %c0_50 = arith.constant 0 : index
    %c0_51 = arith.constant 0 : index
    %c0_52 = arith.constant 0 : index
    %70 = vector.load %arg6[%c0_49, %c0_50, %c0_51, %c0_52] : memref<1x8x8x8xbf16, #tpu.memory_space<vmem>>, vector<1x8x1x8xbf16>
    %71 = vector.shape_cast %70 : vector<1x8x1x8xbf16> to vector<8x8xbf16>
    %72 = vector.shape_cast %69 : vector<8x8xbf16> to vector<1x8x1x8xbf16>
    tpu.vector_store %arg6[%c0_49, %c0_50, %c0_51, %c0_52], %72 {strides = array<i32>} : memref<1x8x8x8xbf16, #tpu.memory_space<vmem>>, vector<1x8x1x8xbf16>,
    %c0_53 = arith.constant 0 : index
    %c9_54 = arith.constant 9 : index
    %73 = vector.load %arg7[%c0_53, %c9_54] : memref<8x72xbf16, #tpu.memory_space<vmem>>, vector<8x8xbf16>
    %c0_55 = arith.constant 0 : index
    %c0_56 = arith.constant 0 : index
    %c1_57 = arith.constant 1 : index
    %c0_58 = arith.constant 0 : index
    %74 = vector.load %arg5[%c0_55, %c0_56, %c1_57, %c0_58] : memref<1x8x8x8xbf16, #tpu.memory_space<vmem>>, vector<1x8x1x8xbf16>
    %75 = vector.shape_cast %74 : vector<1x8x1x8xbf16> to vector<8x8xbf16>
    %76 = vector.shape_cast %73 : vector<8x8xbf16> to vector<1x8x1x8xbf16>
    tpu.vector_store %arg5[%c0_55, %c0_56, %c1_57, %c0_58], %76 {strides = array<i32>} : memref<1x8x8x8xbf16, #tpu.memory_space<vmem>>, vector<1x8x1x8xbf16>,
    %c0_59 = arith.constant 0 : index
    %c9_60 = arith.constant 9 : index
    %77 = vector.load %arg8[%c0_59, %c9_60] : memref<8x72xbf16, #tpu.memory_space<vmem>>, vector<8x8xbf16>
    %c0_61 = arith.constant 0 : index
    %c0_62 = arith.constant 0 : index
    %c1_63 = arith.constant 1 : index
    %c0_64 = arith.constant 0 : index
    %78 = vector.load %arg6[%c0_61, %c0_62, %c1_63, %c0_64] : memref<1x8x8x8xbf16, #tpu.memory_space<vmem>>, vector<1x8x1x8xbf16>
    %79 = vector.shape_cast %78 : vector<1x8x1x8xbf16> to vector<8x8xbf16>
    %80 = vector.shape_cast %77 : vector<8x8xbf16> to vector<1x8x1x8xbf16>
    tpu.vector_store %arg6[%c0_61, %c0_62, %c1_63, %c0_64], %80 {strides = array<i32>} : memref<1x8x8x8xbf16, #tpu.memory_space<vmem>>, vector<1x8x1x8xbf16>,
    %c0_65 = arith.constant 0 : index
    %c18 = arith.constant 18 : index
    %81 = vector.load %arg7[%c0_65, %c18] : memref<8x72xbf16, #tpu.memory_space<vmem>>, vector<8x8xbf16>
    %c0_66 = arith.constant 0 : index
    %c0_67 = arith.constant 0 : index
    %c2_68 = arith.constant 2 : index
    %c0_69 = arith.constant 0 : index
    %82 = vector.load %arg5[%c0_66, %c0_67, %c2_68, %c0_69] : memref<1x8x8x8xbf16, #tpu.memory_space<vmem>>, vector<1x8x1x8xbf16>
    %83 = vector.shape_cast %82 : vector<1x8x1x8xbf16> to vector<8x8xbf16>
    %84 = vector.shape_cast %81 : vector<8x8xbf16> to vector<1x8x1x8xbf16>
    tpu.vector_store %arg5[%c0_66, %c0_67, %c2_68, %c0_69], %84 {strides = array<i32>} : memref<1x8x8x8xbf16, #tpu.memory_space<vmem>>, vector<1x8x1x8xbf16>,
    %c0_70 = arith.constant 0 : index
    %c18_71 = arith.constant 18 : index
    %85 = vector.load %arg8[%c0_70, %c18_71] : memref<8x72xbf16, #tpu.memory_space<vmem>>, vector<8x8xbf16>
    %c0_72 = arith.constant 0 : index
    %c0_73 = arith.constant 0 : index
    %c2_74 = arith.constant 2 : index
    %c0_75 = arith.constant 0 : index
    %86 = vector.load %arg6[%c0_72, %c0_73, %c2_74, %c0_75] : memref<1x8x8x8xbf16, #tpu.memory_space<vmem>>, vector<1x8x1x8xbf16>
    %87 = vector.shape_cast %86 : vector<1x8x1x8xbf16> to vector<8x8xbf16>
    %88 = vector.shape_cast %85 : vector<8x8xbf16> to vector<1x8x1x8xbf16>
    tpu.vector_store %arg6[%c0_72, %c0_73, %c2_74, %c0_75], %88 {strides = array<i32>} : memref<1x8x8x8xbf16, #tpu.memory_space<vmem>>, vector<1x8x1x8xbf16>,
    %c0_76 = arith.constant 0 : index
    %c27 = arith.constant 27 : index
    %89 = vector.load %arg7[%c0_76, %c27] : memref<8x72xbf16, #tpu.memory_space<vmem>>, vector<8x8xbf16>
    %c0_77 = arith.constant 0 : index
    %c0_78 = arith.constant 0 : index
    %c3_79 = arith.constant 3 : index
    %c0_80 = arith.constant 0 : index
    %90 = vector.load %arg5[%c0_77, %c0_78, %c3_79, %c0_80] : memref<1x8x8x8xbf16, #tpu.memory_space<vmem>>, vector<1x8x1x8xbf16>
    %91 = vector.shape_cast %90 : vector<1x8x1x8xbf16> to vector<8x8xbf16>
    %92 = vector.shape_cast %89 : vector<8x8xbf16> to vector<1x8x1x8xbf16>
    tpu.vector_store %arg5[%c0_77, %c0_78, %c3_79, %c0_80], %92 {strides = array<i32>} : memref<1x8x8x8xbf16, #tpu.memory_space<vmem>>, vector<1x8x1x8xbf16>,
    %c0_81 = arith.constant 0 : index
    %c27_82 = arith.constant 27 : index
    %93 = vector.load %arg8[%c0_81, %c27_82] : memref<8x72xbf16, #tpu.memory_space<vmem>>, vector<8x8xbf16>
    %c0_83 = arith.constant 0 : index
    %c0_84 = arith.constant 0 : index
    %c3_85 = arith.constant 3 : index
    %c0_86 = arith.constant 0 : index
    %94 = vector.load %arg6[%c0_83, %c0_84, %c3_85, %c0_86] : memref<1x8x8x8xbf16, #tpu.memory_space<vmem>>, vector<1x8x1x8xbf16>
    %95 = vector.shape_cast %94 : vector<1x8x1x8xbf16> to vector<8x8xbf16>
    %96 = vector.shape_cast %93 : vector<8x8xbf16> to vector<1x8x1x8xbf16>
    tpu.vector_store %arg6[%c0_83, %c0_84, %c3_85, %c0_86], %96 {strides = array<i32>} : memref<1x8x8x8xbf16, #tpu.memory_space<vmem>>, vector<1x8x1x8xbf16>,
    %c0_87 = arith.constant 0 : index
    %c36 = arith.constant 36 : index
    %97 = vector.load %arg7[%c0_87, %c36] : memref<8x72xbf16, #tpu.memory_space<vmem>>, vector<8x8xbf16>
    %c0_88 = arith.constant 0 : index
    %c0_89 = arith.constant 0 : index
    %c4_90 = arith.constant 4 : index
    %c0_91 = arith.constant 0 : index
    %98 = vector.load %arg5[%c0_88, %c0_89, %c4_90, %c0_91] : memref<1x8x8x8xbf16, #tpu.memory_space<vmem>>, vector<1x8x1x8xbf16>
    %99 = vector.shape_cast %98 : vector<1x8x1x8xbf16> to vector<8x8xbf16>
    %100 = vector.shape_cast %97 : vector<8x8xbf16> to vector<1x8x1x8xbf16>
    tpu.vector_store %arg5[%c0_88, %c0_89, %c4_90, %c0_91], %100 {strides = array<i32>} : memref<1x8x8x8xbf16, #tpu.memory_space<vmem>>, vector<1x8x1x8xbf16>,
    %c0_92 = arith.constant 0 : index
    %c36_93 = arith.constant 36 : index
    %101 = vector.load %arg8[%c0_92, %c36_93] : memref<8x72xbf16, #tpu.memory_space<vmem>>, vector<8x8xbf16>
    %c0_94 = arith.constant 0 : index
    %c0_95 = arith.constant 0 : index
    %c4_96 = arith.constant 4 : index
    %c0_97 = arith.constant 0 : index
    %102 = vector.load %arg6[%c0_94, %c0_95, %c4_96, %c0_97] : memref<1x8x8x8xbf16, #tpu.memory_space<vmem>>, vector<1x8x1x8xbf16>
    %103 = vector.shape_cast %102 : vector<1x8x1x8xbf16> to vector<8x8xbf16>
    %104 = vector.shape_cast %101 : vector<8x8xbf16> to vector<1x8x1x8xbf16>
    tpu.vector_store %arg6[%c0_94, %c0_95, %c4_96, %c0_97], %104 {strides = array<i32>} : memref<1x8x8x8xbf16, #tpu.memory_space<vmem>>, vector<1x8x1x8xbf16>,
    %c0_98 = arith.constant 0 : index
    %c45 = arith.constant 45 : index
    %105 = vector.load %arg7[%c0_98, %c45] : memref<8x72xbf16, #tpu.memory_space<vmem>>, vector<8x8xbf16>
    %c0_99 = arith.constant 0 : index
    %c0_100 = arith.constant 0 : index
    %c5 = arith.constant 5 : index
    %c0_101 = arith.constant 0 : index
    %106 = vector.load %arg5[%c0_99, %c0_100, %c5, %c0_101] : memref<1x8x8x8xbf16, #tpu.memory_space<vmem>>, vector<1x8x1x8xbf16>
    %107 = vector.shape_cast %106 : vector<1x8x1x8xbf16> to vector<8x8xbf16>
    %108 = vector.shape_cast %105 : vector<8x8xbf16> to vector<1x8x1x8xbf16>
    tpu.vector_store %arg5[%c0_99, %c0_100, %c5, %c0_101], %108 {strides = array<i32>} : memref<1x8x8x8xbf16, #tpu.memory_space<vmem>>, vector<1x8x1x8xbf16>,
    %c0_102 = arith.constant 0 : index
    %c45_103 = arith.constant 45 : index
    %109 = vector.load %arg8[%c0_102, %c45_103] : memref<8x72xbf16, #tpu.memory_space<vmem>>, vector<8x8xbf16>
    %c0_104 = arith.constant 0 : index
    %c0_105 = arith.constant 0 : index
    %c5_106 = arith.constant 5 : index
    %c0_107 = arith.constant 0 : index
    %110 = vector.load %arg6[%c0_104, %c0_105, %c5_106, %c0_107] : memref<1x8x8x8xbf16, #tpu.memory_space<vmem>>, vector<1x8x1x8xbf16>
    %111 = vector.shape_cast %110 : vector<1x8x1x8xbf16> to vector<8x8xbf16>
    %112 = vector.shape_cast %109 : vector<8x8xbf16> to vector<1x8x1x8xbf16>
    tpu.vector_store %arg6[%c0_104, %c0_105, %c5_106, %c0_107], %112 {strides = array<i32>} : memref<1x8x8x8xbf16, #tpu.memory_space<vmem>>, vector<1x8x1x8xbf16>,
    %c0_108 = arith.constant 0 : index
    %c54 = arith.constant 54 : index
    %113 = vector.load %arg7[%c0_108, %c54] : memref<8x72xbf16, #tpu.memory_space<vmem>>, vector<8x8xbf16>
    %c0_109 = arith.constant 0 : index
    %c0_110 = arith.constant 0 : index
    %c6 = arith.constant 6 : index
    %c0_111 = arith.constant 0 : index
    %114 = vector.load %arg5[%c0_109, %c0_110, %c6, %c0_111] : memref<1x8x8x8xbf16, #tpu.memory_space<vmem>>, vector<1x8x1x8xbf16>
    %115 = vector.shape_cast %114 : vector<1x8x1x8xbf16> to vector<8x8xbf16>
    %116 = vector.shape_cast %113 : vector<8x8xbf16> to vector<1x8x1x8xbf16>
    tpu.vector_store %arg5[%c0_109, %c0_110, %c6, %c0_111], %116 {strides = array<i32>} : memref<1x8x8x8xbf16, #tpu.memory_space<vmem>>, vector<1x8x1x8xbf16>,
    %c0_112 = arith.constant 0 : index
    %c54_113 = arith.constant 54 : index
    %117 = vector.load %arg8[%c0_112, %c54_113] : memref<8x72xbf16, #tpu.memory_space<vmem>>, vector<8x8xbf16>
    %c0_114 = arith.constant 0 : index
    %c0_115 = arith.constant 0 : index
    %c6_116 = arith.constant 6 : index
    %c0_117 = arith.constant 0 : index
    %118 = vector.load %arg6[%c0_114, %c0_115, %c6_116, %c0_117] : memref<1x8x8x8xbf16, #tpu.memory_space<vmem>>, vector<1x8x1x8xbf16>
    %119 = vector.shape_cast %118 : vector<1x8x1x8xbf16> to vector<8x8xbf16>
    %120 = vector.shape_cast %117 : vector<8x8xbf16> to vector<1x8x1x8xbf16>
    tpu.vector_store %arg6[%c0_114, %c0_115, %c6_116, %c0_117], %120 {strides = array<i32>} : memref<1x8x8x8xbf16, #tpu.memory_space<vmem>>, vector<1x8x1x8xbf16>,
    %c0_118 = arith.constant 0 : index
    %c63 = arith.constant 63 : index
    %121 = vector.load %arg7[%c0_118, %c63] : memref<8x72xbf16, #tpu.memory_space<vmem>>, vector<8x8xbf16>
    %c0_119 = arith.constant 0 : index
    %c0_120 = arith.constant 0 : index
    %c7 = arith.constant 7 : index
    %c0_121 = arith.constant 0 : index
    %122 = vector.load %arg5[%c0_119, %c0_120, %c7, %c0_121] : memref<1x8x8x8xbf16, #tpu.memory_space<vmem>>, vector<1x8x1x8xbf16>
    %123 = vector.shape_cast %122 : vector<1x8x1x8xbf16> to vector<8x8xbf16>
    %124 = vector.shape_cast %121 : vector<8x8xbf16> to vector<1x8x1x8xbf16>
    tpu.vector_store %arg5[%c0_119, %c0_120, %c7, %c0_121], %124 {strides = array<i32>} : memref<1x8x8x8xbf16, #tpu.memory_space<vmem>>, vector<1x8x1x8xbf16>,
    %c0_122 = arith.constant 0 : index
    %c63_123 = arith.constant 63 : index
    %125 = vector.load %arg8[%c0_122, %c63_123] : memref<8x72xbf16, #tpu.memory_space<vmem>>, vector<8x8xbf16>
    %c0_124 = arith.constant 0 : index
    %c0_125 = arith.constant 0 : index
    %c7_126 = arith.constant 7 : index
    %c0_127 = arith.constant 0 : index
    %126 = vector.load %arg6[%c0_124, %c0_125, %c7_126, %c0_127] : memref<1x8x8x8xbf16, #tpu.memory_space<vmem>>, vector<1x8x1x8xbf16>
    %127 = vector.shape_cast %126 : vector<1x8x1x8xbf16> to vector<8x8xbf16>
    %128 = vector.shape_cast %125 : vector<8x8xbf16> to vector<1x8x1x8xbf16>
    tpu.vector_store %arg6[%c0_124, %c0_125, %c7_126, %c0_127], %128 {strides = array<i32>} : memref<1x8x8x8xbf16, #tpu.memory_space<vmem>>, vector<1x8x1x8xbf16>,
    return
  }
  func.func @transform_0(%arg0: i32, %arg1: i32, %arg2: memref<5xf32, #tpu.memory_space<smem>>) -> (i32, i32, i32) {
    %c0_i32 = arith.constant 0 : i32
    %c0_i32_0 = arith.constant 0 : i32
    %c0_i32_1 = arith.constant 0 : i32
    %c0_i32_2 = arith.constant 0 : i32
    return %c0_i32, %c0_i32_0, %c0_i32_1 : i32, i32, i32
  }
  func.func @transform_1(%arg0: i32, %arg1: i32, %arg2: memref<5xf32, #tpu.memory_space<smem>>) -> (i32, i32, i32, i32) {
    %c0_i32 = arith.constant 0 : i32
    %c0_i32_0 = arith.constant 0 : i32
    %c0_i32_1 = arith.constant 0 : i32
    return %arg0, %arg1, %c0_i32, %c0_i32_0 : i32, i32, i32, i32
  }
  func.func @transform_2(%arg0: i32, %arg1: i32, %arg2: memref<5xf32, #tpu.memory_space<smem>>) -> (i32, i32, i32, i32) {
    %c0_i32 = arith.constant 0 : i32
    %c0_i32_0 = arith.constant 0 : i32
    %c0_i32_1 = arith.constant 0 : i32
    return %arg0, %c0_i32, %arg1, %c0_i32_0 : i32, i32, i32, i32
  }
  func.func @transform_3(%arg0: i32, %arg1: i32, %arg2: memref<5xf32, #tpu.memory_space<smem>>) -> (i32, i32, i32, i32) {
    %c0_i32 = arith.constant 0 : i32
    %c0_i32_0 = arith.constant 0 : i32
    %c0_i32_1 = arith.constant 0 : i32
    return %arg0, %c0_i32, %arg1, %c0_i32_0 : i32, i32, i32, i32
  }
}

</mosaic_0001>

<bundles_post_ra>
// kernel: reverse_mask_conv.1
= control target key start
LH: loop header
LB: loop body
LE: loop exit
PB: predicated region body
PF: predicated region fallthrough
CT: control target
= control target key end

     0   :  { %s4402_s0 = inlined_call_operand.vmem [shape: f32[5], index: 0, kind: input, shape index: {}]   ;;  %s4403_s1 = inlined_call_operand.vmem [shape: bf16[4,8,16], index: 1, kind: input, shape index: {}]   ;;  %s4404_s2 = inlined_call_operand.vmem [shape: bf16[2,1,16,90], index: 2, kind: input, shape index: {}]   ;;  %s4405_s3 = inlined_call_operand.hbm [shape: bf16[2,8,8,8], index: 3, kind: output, shape index: {0}]   ;;  %s4406_s4 = inlined_call_operand.hbm [shape: bf16[2,8,8,8], index: 4, kind: output, shape index: {1}]  }
   0x1   :  { %s10_s17 = sshll.u32 %s4402_s0, 4  ;;  %s11_s17 = int_to_ptr.vmem [resolvable:$true] %s10_s17 }
   0x2   :  { %s3169_s18 = scalar_lea.vmem %s11_s17, 16  ;;  %p3174_p1 = scmp.lt.s32.totalorder %s11_s17, %s11_s17 }
   0x3   :  { %p3170_p0 = scmp.ne.s32.totalorder %s11_s17, %s3169_s18  ;;  %p3175_p2 = scmp.lt.s32.totalorder %s3169_s18, %s3169_s18 }
   0x5   :  { %p3176_p3 = por %p3175_p2, %p3174_p1 }
   0x7   :  { %p3177_p4 = pnand %p3176_p3, %p3170_p0 }
   0x9   :  { %3180 = shalt.err (!%p3177_p4)  }
   0xa   :  { %s3295_s19 = smov [#allocation5]  }
   0xb   :  { %13 = dma.vmem_to_smem %s11_s17, 16, %s3295_s19, [#allocation4] }
   0xc   :  { %3261 = dma.done.wait [#allocation4], 16 }
   0xd   :  { %3262 = vsyncadd [#allocation4], 4294967280 }
   0xe   :  { %15 = sfence }
   0xf   :  { %16 = vsyncpa [#allocation7], 0 }
  0x10   :  { %18 = vsyncpa [#allocation7 + $0x1], 0 }
  0x11   :  { %19 = vsyncpa [#allocation9], 0 }
  0x12   :  { %21 = vsyncpa [#allocation9 + $0x1], 0  ;;  %s3342_s20 = smov 0   ;;  %s3344_s0 = smov 0  }
  0x13   :  { %s3346_s21 = smov 0   ;;  %s3348_s22 = smov 0  }
  0x14   :  { %s3350_s23 = smov 0   ;;  %s3352_s24 = smov 0  }
  0x15 LB: > { %s2931_s25 = sadd.s32 4294967295, %s3293_s24   ;;  %s2932_s26 = sadd.s32 4294967294, %s3293_s24   ;;  %s3293_s24 = sphi %s3352_s24, %s27_s24   ;;  %s3289_s23 = sphi %s3350_s23, %s4433_s23   ;;  %s3285_s22 = sphi %s3348_s22, %s4432_s22   ;;  %s3281_s21 = sphi %s3346_s21, %s4431_s21   ;;  %s3277_s0 = sphi %s3344_s0, %s4430_s0   ;;  %s3273_s20 = sphi %s3342_s20, %s4429_s20  }
  0x16   : > { %s39_s27 = sadd.s32 1, %s3289_s23  ;;  %s97_s28 = sadd.s32 1, %s3281_s21 }
  0x17   : > { %p41_p5 = scmp.ge.s32.totalorder %s39_s27, 2  ;;  %p107_p6 = scmp.ne.s32.totalorder %s3281_s21, %s3277_s0 }
  0x18   : > { %p108_p7 = scmp.eq.s32.totalorder %s2931_s25, 1  ;;  %p113_p8 = scmp.ne.s32.totalorder %s3277_s0, %s3273_s20 }
  0x19   : > { %s4435_s27 = smov (%p41_p5, %s39_s27), 0  ;;  %p114_p10 = scmp.eq.s32.totalorder %s2932_s26, 1 }
  0x1a   : > { %p3382_p9 = por %p108_p7, %p107_p6  ;;  %s92_s30 = ssub.s32 %s3289_s23, %s4435_s27 }
  0x1b   : > { %p2935_p11 = scmp.ge.s32.totalorder %s3293_s24, 1  ;;  %p95_p12 = scmp.eq.s32.totalorder %s92_s30, 0 }
  0x1c   : > { %p3389_p13 = por %p114_p10, %p113_p8  ;;  %p175_p0 = scmp.lt.s32.totalorder %s3293_s24, 3 }
  0x1d   : > { %s3395_s6 = scalar_select %p95_p12, %s3281_s21, %s97_s28  }
  0x1e   : > { %p176_p1 = pnand %p2935_p11, %p175_p0 }
  0x1f   : > { %p208_p2 = scmp.lt.s32.totalorder (!%p176_p1), %s3285_s22, 1  ;;  %v3296_v0 = vmov (!%p176_p1), 0.0   ;;  %vm3297_vm0 = vmmov (!%p176_p1), 0   ;;  %s3298_s12 = smov (!%p176_p1), 127   ;;  %v2944_v3 = vld [vmem:[%s4403_s1 + $0x4] sm:$0xf] (!%p176_p1)  ;;  %v468_v46 = vlaneseq (!%p176_p1) }
  0x20   : > { %179 = sbr.rel (%p176_p1) target bundleno = 792 (0x318), region = 28  ;;  %3052 = vmatprep.subr.bf16.mxu1 (!%p176_p1), %v3296_v0  ;;  %3054 = vmatprep.mubr.msk.bf16.mxu1 (!%p176_p1), %vm3297_vm0, %v3296_v0  ;;  %s3299_s13 = smov (!%p176_p1), 118   ;;  %vm236_vm1 = vcmask (!%p176_p1), 130048   ;;  %v2948_v5 = vld [vmem:[%s4403_s1 + $0x8] sm:$0xf] (!%p176_p1)  ;;  %v3301_v41 = vmov (!%p176_p1), 1.0  }
  0x21   : > { %3064 = vmatprep.subr.bf16.mxu0 (!%p176_p1), %v3296_v0  ;;  %3066 = vmatprep.mubr.msk.bf16.mxu0 (!%p176_p1), %vm3297_vm0, %v3296_v0  ;;  %s3300_s14 = smov (!%p176_p1), 119   ;;  %v225_v7 = vld [vmem:[%s4403_s1] sm:$0xf] (!%p176_p1)  ;;  %v2950_v8 = vld [vmem:[%s4403_s1 + $0xc] sm:$0xf] (!%p176_p1)  ;;  %s2940_s30 = sld [smem:[#allocation5 + $0x1]] (!%p176_p1) }
  0x22   : > { %s218_s9 = sld [smem:[#allocation5]] (!%p176_p1)  ;;  %s2943_s10 = sld [smem:[#allocation5 + $0x4]] (!%p176_p1)  ;;  %v3302_v43 = vmov (!%p176_p1), 1966171168   ;;  %vm441_vm4 = vcmask (!%p176_p1), 584704   ;;  %v3303_v48 = vmov (!%p176_p1), 286326784  }
  0x23   : > { %v466_v44 = vunpack.c.l.s4 (!%p176_p1), %v3302_v43  ;;  %v498_v49 = vunpack.c.l.s4 (!%p176_p1), %v3303_v48  ;;  %v469_v51 = vshrl.u32 (!%p176_p1), %v468_v46, 7  ;;  %vm561_vm5 = vcmask (!%p176_p1), 57344   ;;  %s3304_s16 = smov (!%p176_p1), 110   ;;  %s3305_s17 = smov (!%p176_p1), 101  }
  0x24   : > { %vm562_vm6 = vsmask.f32 (!%p176_p1), 256  ;;  %s3306_s19 = smov (!%p176_p1), 92   ;;  %s3307_s25 = smov (!%p176_p1), 83   ;;  %vm840_vm8 = vsmask.f32 (!%p176_p1), 7938 }
  0x25   : > { %v467_v50 = vunpack.c.0.s8 (!%p176_p1), %v466_v44  ;;  %v499_v52 = vunpack.c.0.s8 (!%p176_p1), %v498_v49  ;;  %vm3454_vm7 = vmand (!%p176_p1), %vm561_vm5, %vm562_vm6  ;;  %s3308_s26 = smov (!%p176_p1), 74   ;;  %s3309_s28 = smov (!%p176_p1), 65   ;;  %vm1134_vm10 = vcmask (!%p176_p1), 58369   ;;  %vm1135_vm11 = vsmask.f32 (!%p176_p1), 1280 }
  0x26   : > { %vm3713_vm9 = vmand (!%p176_p1), %vm561_vm5, %vm840_vm8  ;;  %vm1723_vm13 = vcmask (!%p176_p1), 59394   ;;  %vm1724_vm14 = vsmask.f32 (!%p176_p1), 2304  ;;  %vm1429_vm15 = vsmask.f32 (!%p176_p1), 7942 }
  0x27   : > { %s209_s7 = scalar_select %p208_p2, %s3285_s22, 1  ;;  %v422_v14 = vstv %s2940_s30  ;;  %v3443_v53 = vsub.s32 %v467_v50, %v469_v51  ;;  %v3448_v56 = vsub.s32 %v499_v52, %v469_v51  ;;  %vm3727_vm12 = vmand %vm1134_vm10, %vm1135_vm11 }
  0x28   : > { %v448_v32 = vstv %s2943_s10  ;;  %v430_v33 = vstv %s218_s9 }
  0x29   : > { %s3041_s8 = sshll.u32 %s209_s7, 3  ;;  %s2941_s7 = sld [smem:[#allocation5 + $0x2]] }
  0x2a   : > { %s216_s11 = scalar_lea.vmem %s4404_s2, %s3041_s8  ;;  %s2942_s8 = sld [smem:[#allocation5 + $0x3]] }
  0x2b   : > { %v3162_v1 = vld [vmem:[%s216_s11] sm:$0xff]   ;;  %s2952_s11 = sadd.f32 -1.0, %s218_s9 }
  0x2c   : > { %233 = vrot.lane.b32.xlu0 %v3162_v1, %s3298_s12  ;;  %375 = vrot.lane.b32.xlu1 %v3162_v1, %s3299_s13  ;;  %s3441_s12 = sand.u32 1, %s3277_s0  }
  0x2d   : > { %v431_v34 = vstv %s2952_s11  ;;  %s2936_s13 = sshll.u32 %s3441_s12, 5  ;;  %s2780_s10 = scalar_lea.sflag [#allocation7], %s3441_s12 }
  0x2e   : > { %s3460_s15 = scalar_lea.vmem [#allocation6], %s2936_s13  ;;  %s3544_s18 = scalar_lea.vmem [#allocation8], %s2936_s13 }
  0x2f   : > { %v426_v16 = vstv %s2941_s7  ;;  %v573_v20 = vld [vmem:[%s3460_s15 + $0xc] sm:$0x1]  ;;  %s2799_s30 = sshll.u32 %s3460_s15, 4  ;;  %s3310_s13 = smov [#allocation6]   ;;  %s4091_s30 = int_to_ptr.vmem [resolvable:$true] %s2799_s30 }
  0x30   : > { %326 = vrot.lane.b32.xlu0 %v3162_v1, %s3300_s14  ;;  %v427_v17 = vstv %s2942_s8  ;;  %s3181_s11 = scalar_lea.vmem %s4091_s30, 512 }
  0x31   : > { %p3182_p3 = scmp.ne.s32.totalorder %s4091_s30, %s3181_s11 }
  0x33   : > { %p3183_p4 = pnand %p3182_p3, %p3382_p9 }
  0x35   : > { %p3184_p5 = pneg %p3183_p4 }
  0x9e   : > { %v234_v2 = vpop.permute.xlu0 %233  ;;  %v376_v6 = vpop.permute.xlu1 %375 }
  0x9f   : > { %3053 = vmatpush3.bf16.msra.mxu1 %v234_v2  ;;  %v564_v2 = vld [vmem:[%s3460_s15] sm:$0x1] }
  0xa0   : > { %3058 = vmatprep.subr.bf16.mxu1 %v3296_v0 }
  0xa2   : > { %3055 = vmatmul.mubr.msk.bf16.vlgmr.msra.gmra.mrb[0].mxu1 %vm236_vm1, %v2944_v3  ;;  %v327_v4 = vpop.permute.xlu0 %326 }
  0xa3   : > { %3065 = vmatpush3.bf16.msra.mxu0 %v327_v4  ;;  %3059 = vmatpush3.bf16.msra.mxu1 %v3162_v1 }
  0xa4   : > { %3070 = vmatprep.subr.bf16.mxu0 %v3296_v0  ;;  %3060 = vmatprep.mubr.msk.bf16.mxu1 %vm3297_vm0, %v3296_v0 }
  0xa6   : > { %3067 = vmatmul.mubr.msk.bf16.vlgmr.msra.gmra.mrb[0].mxu0 %vm236_vm1, %v2948_v5 }
  0xa7   : > { %3071 = vmatpush3.bf16.msra.mxu0 %v376_v6  ;;  %3072 = vmatprep.mubr.msk.bf16.mxu0 %vm3297_vm0, %v3296_v0  ;;  %vm3751_vm0 = vmand %vm1723_vm13, %vm1724_vm14 }
  0xae   : > { %3061 = vmatmul.mubr.msk.bf16.vlgmr.msra.gmra.mrb[0].mxu1 %vm236_vm1, %v225_v7 }
  0xb2   : > { %3073 = vmatmul.mubr.msk.bf16.vlgmr.msra.gmra.mrb[0].mxu0 %vm236_vm1, %v2950_v8  ;;  %vm3757_vm1 = vmand %vm1134_vm10, %vm1429_vm15 }
 0x181   : > { %v318_v9 = vpop.f32.mrb[0].mxu1 }
 0x182   : > { %v3062_v10 = vpop.f32.mrb[1].mxu1 }
 0x183   : > { %v321_v11 = vpop.f32.mrb[2].mxu1  ;;  %v567_v10 = vld [vmem:[%s3460_s15 + $0x4] sm:$0x1] }
 0x184   : > { %v3063_v12 = vpop.f32.mrb[3].mxu1  ;;  %v570_v11 = vld [vmem:[%s3460_s15 + $0x8] sm:$0x1] }
 0x185   : > { %v415_v13 = vpop.f32.mrb[0].mxu0 }
 0x186   : > { %v3076_v15 = vadd.f32 %v415_v13, %v318_v9  ;;  %v3074_v18 = vpop.f32.mrb[1].mxu0 }
 0x187   : > { %v418_v19 = vpop.f32.mrb[2].mxu0 }
 0x188   : > { %vm3423_vm2 = vcmp.lt.f32.partialorder %v3076_v15, %v422_v14  ;;  %v424_v21 = vsub.f32 %v3076_v15, %v422_v14  ;;  %v443_v22 = vmax.f32 %v3076_v15, 0.0  ;;  %v3075_v23 = vpop.f32.mrb[3].mxu0 }
 0x189   : > { %v428_v24 = vsel %vm3423_vm2, %v426_v16, %v427_v17  ;;  %v432_v38 = vsel %vm3423_vm2, %v430_v33, %v431_v34  ;;  %v433_v42 = vsel %vm3423_vm2, 0.0, %v3301_v41  ;;  %vm2312_vm2 = vcmask 60419  }
 0x18a   : > { %v425_v25 = vmul.f32 %v424_v21, %v424_v21  ;;  %v434_v26 = vsub.f32 0.0, %v428_v24  ;;  %vm3429_vm3 = vcmp.gt.f32.partialorder %v443_v22, 0.0  ;;  %v576_v21 = vld [vmem:[%s3460_s15 + $0x10] sm:$0x1] }
 0x18b   : > { %v445_v28 = vsel %vm3429_vm3, %v443_v22, 1.0 }
 0x18c   : > { %v435_v29 = vmul.f32 %v434_v26, %v425_v25  ;;  %3163 = vlog2.f32 %v445_v28  ;;  %v579_v25 = vld [vmem:[%s3460_s15 + $0x14] sm:$0x1]  ;;  %v582_v26 = vld [vmem:[%s3460_s15 + $0x18] sm:$0x1] }
 0x18e   : > { %v436_v30 = vmul.f32 1.442695, %v435_v29 }
 0x190   : > { %3165 = vpow2.f32 %v436_v30 }
 0x196   : > { %v3164_v31 = vpop.eup %3163 }
 0x197   : > { %v447_v35 = vmul.f32 0.6931472, %v3164_v31 }
 0x199   : > { %v449_v36 = vmul.f32 %v448_v32, %v447_v35  ;;  %v585_v35 = vld [vmem:[%s3460_s15 + $0x1c] sm:$0x1] }
 0x19a   : > { %v3166_v37 = vpop.eup %3165 }
 0x19b   : > { %v438_v39 = vmul.f32 %v3166_v37, %v432_v38  ;;  %v450_v40 = vmul.f32 1.442695, %v449_v36 }
 0x19d   : > { %v439_v45 = vadd.f32 %v438_v39, %v433_v42  ;;  %3167 = vpow2.f32 %v450_v40 }
 0x19f   : > { %v440_v47 = vpack.c.bf16 %v439_v45, %v439_v45 }
 0x1a1   : > { %442 = vst.msk [vmem:[#allocation2] sm:$0xf] %vm441_vm4, %v440_v47 }
 0x1a7   : > { %v3168_v54 = vpop.eup %3167 }
 0x1a8   : > { %v452_v55 = vsel %vm3429_vm3, %v3168_v54, 0.0  ;;  %v2963_v57 = vld.sshfl [vmem:[#allocation2] sm:$0x33 pattern:$0x75316420] }
 0x1a9   : > { %v453_v58 = vpack.c.bf16 %v452_v55, %v452_v55  ;;  %v734_v59 = vrot.slane %v2963_v57, %v3443_v53  ;;  %v727_v60 = vcombine.high %v2963_v57, %v2963_v57  ;;  %v694_v57 = vld [vmem:[%s3544_s18] sm:$0x1]  ;;  %vm2313_vm3 = vsmask.f32 3328 }
 0x1aa   : > { %vm3785_vm5 = vmand %vm2312_vm2, %vm2313_vm3 }
 0x1ab   : > { %454 = vst.msk [vmem:[#allocation3] sm:$0xf] %vm441_vm4, %v453_v58  ;;  %v2964_v61 = vpack.i.b16 %v734_v59, %v734_v59  ;;  %v745_v62 = vunpack.i.h.s16 %v734_v59  ;;  %v741_v63 = vrot.slane %v727_v60, %v3443_v53  ;;  %v742_v0 = vcombine.high %v734_v59, %v734_v59 }
 0x1ac   : > { %vm2018_vm4 = vsmask.f32 7946 }
 0x1ad   : > { %v3464_v3 = vrot.slane %v2964_v61, %v3448_v56  ;;  %v753_v4 = vpack.i.b16 %v745_v62, %v745_v62  ;;  %v2965_v5 = vpack.i.b16 %v741_v63, %v741_v63  ;;  %v747_v6 = vunpack.i.h.s16 %v741_v63  ;;  %vm3791_vm6 = vmand %vm1723_vm13, %vm2018_vm4 }
 0x1ae   : > { %v2966_v7 = vpack.i.b16 %v742_v0, %v742_v0  ;;  %v749_v8 = vunpack.i.h.s16 %v742_v0  ;;  %v743_v9 = vcombine.high %v741_v63, %v741_v63 }
 0x1af   : > { %816 = vrot.lane.b32.xlu1 %v3464_v3, %s3300_s14  ;;  %v3471_v12 = vrot.slane %v753_v4, %v3448_v56  ;;  %v3474_v13 = vrot.slane %v2965_v5, %v3448_v56  ;;  %v755_v14 = vpack.i.b16 %v747_v6, %v747_v6  ;;  %v565_v15 = vsel %vm3454_vm7, %v3464_v3, %v564_v2 }
 0x1b0   : > { %v3480_v16 = vrot.slane %v2966_v7, %v3448_v56  ;;  %v757_v17 = vpack.i.b16 %v749_v8, %v749_v8  ;;  %v2967_v18 = vpack.i.b16 %v743_v9, %v743_v9  ;;  %v751_v19 = vunpack.i.h.s16 %v743_v9  ;;  %566 = vst [vmem:[%s3460_s15] sm:$0x1] %v565_v15  ;;  %v697_v7 = vld [vmem:[%s3544_s18 + $0x4] sm:$0x1] }
 0x1b1   : > { %818 = vrot.lane.b32.xlu0 %v3471_v12, %s3300_s14  ;;  %v3488_v22 = vrot.slane %v755_v14, %v3448_v56  ;;  %v568_v23 = vsel %vm3454_vm7, %v3471_v12, %v567_v10  ;;  %v571_v24 = vsel %vm3454_vm7, %v3474_v13, %v570_v11 }
 0x1b2   : > { %v3499_v27 = vrot.slane %v757_v17, %v3448_v56  ;;  %v3502_v28 = vrot.slane %v2967_v18, %v3448_v56  ;;  %v759_v29 = vpack.i.b16 %v751_v19, %v751_v19  ;;  %v2968_v30 = vld.sshfl [vmem:[#allocation3] sm:$0x33 pattern:$0x75316420]  ;;  %569 = vst [vmem:[%s3460_s15 + $0x4] sm:$0x1] %v568_v23  ;;  %v577_v34 = vsel %vm3454_vm7, %v3480_v16, %v576_v21 }
 0x1b3   : > { %572 = vst [vmem:[%s3460_s15 + $0x8] sm:$0x1] %v571_v24  ;;  %1110 = vrot.lane.b32.xlu1 %v3464_v3, %s3304_s16  ;;  %v882_v31 = vrot.slane %v2968_v30, %v3443_v53  ;;  %v875_v32 = vcombine.high %v2968_v30, %v2968_v30  ;;  %v574_v33 = vsel %vm3454_vm7, %v3488_v22, %v573_v20  ;;  %v2958_v36 = vld.sshfl [vmem:[#allocation3] sm:$0x33 pattern:$0x75316420] }
 0x1b4   : > { %v3517_v37 = vrot.slane %v759_v29, %v3448_v56  ;;  %575 = vst [vmem:[%s3460_s15 + $0xc] sm:$0x1] %v574_v33  ;;  %578 = vst [vmem:[%s3460_s15 + $0x10] sm:$0x1] %v577_v34  ;;  %v580_v38 = vsel %vm3454_vm7, %v3499_v27, %v579_v25  ;;  %v583_v39 = vsel %vm3454_vm7, %v3502_v28, %v582_v26  ;;  %v700_v23 = vld [vmem:[%s3544_s18 + $0x8] sm:$0x1] }
 0x1b5   : > { %v604_v40 = vrot.slane %v2958_v36, %v3443_v53  ;;  %1112 = vrot.lane.b32.xlu0 %v3471_v12, %s3304_s16  ;;  %v2969_v41 = vpack.i.b16 %v882_v31, %v882_v31  ;;  %v893_v42 = vunpack.i.h.s16 %v882_v31  ;;  %581 = vst [vmem:[%s3460_s15 + $0x14] sm:$0x1] %v580_v38  ;;  %584 = vst [vmem:[%s3460_s15 + $0x18] sm:$0x1] %v583_v39  ;;  %v706_v24 = vld [vmem:[%s3544_s18 + $0x10] sm:$0x1] }
 0x1b6   : > { %v889_v43 = vrot.slane %v875_v32, %v3443_v53  ;;  %v890_v44 = vcombine.high %v882_v31, %v882_v31  ;;  %v586_v45 = vsel %vm3454_vm7, %v3517_v37, %v585_v35  ;;  %v597_v50 = vcombine.high %v2958_v36, %v2958_v36  ;;  %v703_v32 = vld [vmem:[%s3544_s18 + $0xc] sm:$0x1] }
 0x1b7   : > { %v2959_v46 = vpack.i.b16 %v604_v40, %v604_v40  ;;  %1405 = vrot.lane.b32.xlu1 %v3464_v3, %s3305_s17  ;;  %v3539_v47 = vrot.slane %v2969_v41, %v3448_v56  ;;  %v901_v48 = vpack.i.b16 %v893_v42, %v893_v42  ;;  %587 = vst [vmem:[%s3460_s15 + $0x1c] sm:$0x1] %v586_v45  ;;  %v615_v49 = vunpack.i.h.s16 %v604_v40  ;;  %v712_v41 = vld [vmem:[%s3544_s18 + $0x18] sm:$0x1] }
 0x1b8   : > { %v2970_v51 = vpack.i.b16 %v889_v43, %v889_v43  ;;  %v895_v52 = vunpack.i.h.s16 %v889_v43  ;;  %v2971_v54 = vpack.i.b16 %v890_v44, %v890_v44  ;;  %v897_v55 = vunpack.i.h.s16 %v890_v44 }
 0x1b9   : > { %1407 = vrot.lane.b32.xlu0 %v3471_v12, %s3305_s17  ;;  %v3550_v58 = vrot.slane %v901_v48, %v3448_v56  ;;  %v891_v59 = vcombine.high %v889_v43, %v889_v43  ;;  %v636_v60 = vrot.slane %v2959_v46, %v3448_v56  ;;  %v623_v61 = vpack.i.b16 %v615_v49, %v615_v49  ;;  %v715_v46 = vld [vmem:[%s3544_s18 + $0x1c] sm:$0x1] }
 0x1ba   : > { %v3554_v62 = vrot.slane %v2970_v51, %v3448_v56  ;;  %v903_v63 = vpack.i.b16 %v895_v52, %v895_v52  ;;  %v3557_v0 = vrot.slane %v2971_v54, %v3448_v56  ;;  %v905_v2 = vpack.i.b16 %v897_v55, %v897_v55  ;;  %v1140_v52 = vld [vmem:[%s3460_s15 + $0x4] sm:$0x2] }
 0x1bb   : > { %1699 = vrot.lane.b32.xlu1 %v3464_v3, %s3306_s19  ;;  %v2972_v4 = vpack.i.b16 %v891_v59, %v891_v59  ;;  %v899_v5 = vunpack.i.h.s16 %v891_v59  ;;  %v695_v6 = vsel %vm3454_vm7, %v636_v60, %v694_v57  ;;  %v643_v9 = vrot.slane %v623_v61, %v3448_v56 }
 0x1bc   : > { %v3565_v8 = vrot.slane %v903_v63, %v3448_v56  ;;  %696 = vst [vmem:[%s3544_s18] sm:$0x1] %v695_v6  ;;  %v611_v10 = vrot.slane %v597_v50, %v3443_v53  ;;  %v612_v11 = vcombine.high %v604_v40, %v604_v40  ;;  %v3573_v14 = vrot.slane %v905_v2, %v3448_v56  ;;  %v709_v40 = vld [vmem:[%s3544_s18 + $0x14] sm:$0x1]  ;;  %v1726_v63 = vld [vmem:[%s3460_s15] sm:$0x4] }
 0x1bd   : > { %1701 = vrot.lane.b32.xlu0 %v3471_v12, %s3306_s19  ;;  %v3576_v15 = vrot.slane %v2972_v4, %v3448_v56  ;;  %v907_v17 = vpack.i.b16 %v899_v5, %v899_v5  ;;  %v698_v18 = vsel %vm3454_vm7, %v643_v9, %v697_v7  ;;  %v1729_v5 = vld [vmem:[%s3460_s15 + $0x4] sm:$0x4] }
 0x1be   : > { %v2960_v19 = vpack.i.b16 %v611_v10, %v611_v10  ;;  %v617_v20 = vunpack.i.h.s16 %v611_v10  ;;  %v2961_v21 = vpack.i.b16 %v612_v11, %v612_v11  ;;  %699 = vst [vmem:[%s3544_s18 + $0x4] sm:$0x1] %v698_v18  ;;  %v619_v25 = vunpack.i.h.s16 %v612_v11 }
 0x1bf   : > { %1994 = vrot.lane.b32.xlu1 %v3464_v3, %s3307_s25  ;;  %v3583_v53 = vrot.slane %v907_v17, %v3448_v56  ;;  %v613_v26 = vcombine.high %v611_v10, %v611_v10 }
 0x1c0   : > { %v650_v29 = vrot.slane %v2960_v19, %v3448_v56  ;;  %v625_v30 = vpack.i.b16 %v617_v20, %v617_v20  ;;  %v664_v31 = vrot.slane %v2961_v21, %v3448_v56  ;;  %v627_v33 = vpack.i.b16 %v619_v25, %v619_v25 }
 0x1c1   : > { %1996 = vrot.lane.b32.xlu0 %v3471_v12, %s3307_s25  ;;  %v2962_v34 = vpack.i.b16 %v613_v26, %v613_v26  ;;  %v621_v35 = vunpack.i.h.s16 %v613_v26  ;;  %v2318_v26 = vld [vmem:[%s3460_s15 + $0x4] sm:$0x8] }
 0x1c2   : > { %v701_v36 = vsel %vm3454_vm7, %v650_v29, %v700_v23  ;;  %v657_v38 = vrot.slane %v625_v30, %v3448_v56  ;;  %v707_v39 = vsel %vm3454_vm7, %v664_v31, %v706_v24  ;;  %v671_v42 = vrot.slane %v627_v33, %v3448_v56  ;;  %v2315_v23 = vld [vmem:[%s3460_s15] sm:$0x8] }
 0x1c3   : > { %2288 = vrot.lane.b32.xlu1 %v3464_v3, %s3308_s26  ;;  %702 = vst [vmem:[%s3544_s18 + $0x8] sm:$0x1] %v701_v36  ;;  %708 = vst [vmem:[%s3544_s18 + $0x10] sm:$0x1] %v707_v39  ;;  %v678_v43 = vrot.slane %v2962_v34, %v3448_v56  ;;  %v629_v44 = vpack.i.b16 %v621_v35, %v621_v35 }
 0x1c4   : > { %v704_v45 = vsel %vm3454_vm7, %v657_v38, %v703_v32  ;;  %v710_v48 = vsel %vm3454_vm7, %v671_v42, %v709_v40  ;;  %v848_v40 = vld [vmem:[%s3460_s15 + $0x8] sm:$0x1] }
 0x1c5   : > { %2290 = vrot.lane.b32.xlu0 %v3471_v12, %s3308_s26  ;;  %705 = vst [vmem:[%s3544_s18 + $0xc] sm:$0x1] %v704_v45  ;;  %v713_v49 = vsel %vm3454_vm7, %v678_v43, %v712_v41  ;;  %v685_v50 = vrot.slane %v629_v44, %v3448_v56  ;;  %711 = vst [vmem:[%s3544_s18 + $0x14] sm:$0x1] %v710_v48  ;;  %v851_v44 = vld [vmem:[%s3460_s15 + $0xc] sm:$0x1] }
 0x1c6   : > { %714 = vst [vmem:[%s3544_s18 + $0x18] sm:$0x1] %v713_v49 }
 0x1c7   : > { %2583 = vrot.lane.b32.xlu1 %v3464_v3, %s3309_s28  ;;  %v716_v51 = vsel %vm3454_vm7, %v685_v50, %v715_v46  ;;  %v842_v3 = vld [vmem:[%s3460_s15] sm:$0x1]  ;;  %vm2607_vm7 = vsmask.f32 7950  ;;  %v854_v50 = vld [vmem:[%s3460_s15 + $0x10] sm:$0x1] }
 0x1c8   : > { %717 = vst [vmem:[%s3544_s18 + $0x1c] sm:$0x1] %v716_v51  ;;  %vm3819_vm8 = vmand %vm2312_vm2, %vm2607_vm7 }
 0x1c9   : > { %2585 = vrot.lane.b32.xlu0 %v3471_v12, %s3309_s28 }
 0x1cb   : > { %820 = vrot.lane.b32.xlu1 %v3474_v13, %s3300_s14 }
 0x1cd   : > { %822 = vrot.lane.b32.xlu0 %v3488_v22, %s3300_s14 }
 0x1cf   : > { %824 = vrot.lane.b32.xlu1 %v3480_v16, %s3300_s14 }
 0x1d1   : > { %826 = vrot.lane.b32.xlu0 %v3499_v27, %s3300_s14 }
 0x1d3   : > { %1114 = vrot.lane.b32.xlu1 %v3474_v13, %s3304_s16 }
 0x1d5   : > { %1116 = vrot.lane.b32.xlu0 %v3488_v22, %s3304_s16 }
 0x1d7   : > { %1118 = vrot.lane.b32.xlu1 %v3480_v16, %s3304_s16 }
 0x1d9   : > { %1120 = vrot.lane.b32.xlu0 %v3499_v27, %s3304_s16 }
 0x1db   : > { %1409 = vrot.lane.b32.xlu1 %v3474_v13, %s3305_s17 }
 0x1dd   : > { %1411 = vrot.lane.b32.xlu0 %v3488_v22, %s3305_s17 }
 0x1df   : > { %1413 = vrot.lane.b32.xlu1 %v3480_v16, %s3305_s17 }
 0x1e1   : > { %1415 = vrot.lane.b32.xlu0 %v3499_v27, %s3305_s17 }
 0x1e3   : > { %1703 = vrot.lane.b32.xlu1 %v3474_v13, %s3306_s19 }
 0x1e5   : > { %1705 = vrot.lane.b32.xlu0 %v3488_v22, %s3306_s19 }
 0x1e7   : > { %1707 = vrot.lane.b32.xlu1 %v3480_v16, %s3306_s19 }
 0x1e9   : > { %1709 = vrot.lane.b32.xlu0 %v3499_v27, %s3306_s19 }
 0x1eb   : > { %1998 = vrot.lane.b32.xlu1 %v3474_v13, %s3307_s25 }
 0x1ed   : > { %2000 = vrot.lane.b32.xlu0 %v3488_v22, %s3307_s25 }
 0x1ef   : > { %2002 = vrot.lane.b32.xlu1 %v3480_v16, %s3307_s25 }
 0x1f1   : > { %2004 = vrot.lane.b32.xlu0 %v3499_v27, %s3307_s25 }
 0x1f3   : > { %2292 = vrot.lane.b32.xlu1 %v3474_v13, %s3308_s26 }
 0x1f5   : > { %2294 = vrot.lane.b32.xlu0 %v3488_v22, %s3308_s26 }
 0x1f7   : > { %2296 = vrot.lane.b32.xlu1 %v3480_v16, %s3308_s26 }
 0x1f9   : > { %2298 = vrot.lane.b32.xlu0 %v3499_v27, %s3308_s26 }
 0x1fb   : > { %2587 = vrot.lane.b32.xlu1 %v3474_v13, %s3309_s28 }
 0x1fd   : > { %2589 = vrot.lane.b32.xlu0 %v3488_v22, %s3309_s28 }
 0x1ff   : > { %2591 = vrot.lane.b32.xlu1 %v3480_v16, %s3309_s28  ;;  %v845_v16 = vld [vmem:[%s3460_s15 + $0x4] sm:$0x1] }
 0x201   : > { %2593 = vrot.lane.b32.xlu0 %v3499_v27, %s3309_s28  ;;  %v1137_v27 = vld [vmem:[%s3460_s15] sm:$0x2] }
 0x203   : > { %828 = vrot.lane.b32.xlu1 %v3502_v28, %s3300_s14 }
 0x205   : > { %830 = vrot.lane.b32.xlu0 %v3517_v37, %s3300_s14 }
 0x207   : > { %1122 = vrot.lane.b32.xlu1 %v3502_v28, %s3304_s16 }
 0x209   : > { %1124 = vrot.lane.b32.xlu0 %v3517_v37, %s3304_s16 }
 0x20b   : > { %1417 = vrot.lane.b32.xlu1 %v3502_v28, %s3305_s17 }
 0x20d   : > { %1419 = vrot.lane.b32.xlu0 %v3517_v37, %s3305_s17 }
 0x20f   : > { %1711 = vrot.lane.b32.xlu1 %v3502_v28, %s3306_s19 }
 0x211   : > { %1713 = vrot.lane.b32.xlu0 %v3517_v37, %s3306_s19 }
 0x213   : > { %2006 = vrot.lane.b32.xlu1 %v3502_v28, %s3307_s25 }
 0x215   : > { %2008 = vrot.lane.b32.xlu0 %v3517_v37, %s3307_s25 }
 0x217   : > { %2300 = vrot.lane.b32.xlu1 %v3502_v28, %s3308_s26 }
 0x219   : > { %2302 = vrot.lane.b32.xlu0 %v3517_v37, %s3308_s26 }
 0x21b   : > { %2595 = vrot.lane.b32.xlu1 %v3502_v28, %s3309_s28 }
 0x21d   : > { %2597 = vrot.lane.b32.xlu0 %v3517_v37, %s3309_s28 }
 0x21f   : > { %964 = vrot.lane.b32.xlu1 %v3539_v47, %s3300_s14 }
 0x221   : > { %v817_v1 = vpop.permute.xlu1 %816  ;;  %966 = vrot.lane.b32.xlu0 %v3550_v58, %s3300_s14 }
 0x222   : > { %v843_v12 = vsel %vm3713_vm9, %v817_v1, %v842_v3  ;;  %v857_v3 = vld [vmem:[%s3460_s15 + $0x14] sm:$0x1] }
 0x223   : > { %844 = vst [vmem:[%s3460_s15] sm:$0x1] %v843_v12  ;;  %v819_v13 = vpop.permute.xlu0 %818  ;;  %1259 = vrot.lane.b32.xlu1 %v3539_v47, %s3304_s16  ;;  %v1143_v12 = vld [vmem:[%s3460_s15 + $0x8] sm:$0x2] }
 0x224   : > { %v846_v28 = vsel %vm3713_vm9, %v819_v13, %v845_v16 }
 0x225   : > { %847 = vst [vmem:[%s3460_s15 + $0x4] sm:$0x1] %v846_v28  ;;  %v1111_v37 = vpop.permute.xlu1 %1110  ;;  %1261 = vrot.lane.b32.xlu0 %v3550_v58, %s3304_s16 }
 0x226   : > { %v1138_v54 = vsel %vm3727_vm12, %v1111_v37, %v1137_v27  ;;  %v1146_v27 = vld [vmem:[%s3460_s15 + $0xc] sm:$0x2] }
 0x227   : > { %1139 = vst [vmem:[%s3460_s15] sm:$0x2] %v1138_v54  ;;  %v1113_v55 = vpop.permute.xlu0 %1112  ;;  %1553 = vrot.lane.b32.xlu1 %v3539_v47, %s3305_s17 }
 0x228   : > { %v1141_v57 = vsel %vm3727_vm12, %v1113_v55, %v1140_v52  ;;  %v1149_v52 = vld [vmem:[%s3460_s15 + $0x10] sm:$0x2] }
 0x229   : > { %1142 = vst [vmem:[%s3460_s15 + $0x4] sm:$0x2] %v1141_v57  ;;  %v1406_v59 = vpop.permute.xlu1 %1405  ;;  %1555 = vrot.lane.b32.xlu0 %v3550_v58, %s3305_s17  ;;  %v1152_v57 = vld [vmem:[%s3460_s15 + $0x14] sm:$0x2] }
 0x22b   : > { %v1408_v60 = vpop.permute.xlu0 %1407  ;;  %1848 = vrot.lane.b32.xlu1 %v3539_v47, %s3306_s19 }
 0x22d   : > { %v1700_v4 = vpop.permute.xlu1 %1699  ;;  %1850 = vrot.lane.b32.xlu0 %v3550_v58, %s3306_s19 }
 0x22e   : > { %v1431_v6 = vld [vmem:[%s3460_s15] sm:$0x2]  ;;  %v1727_v7 = vsel %vm3751_vm0, %v1700_v4, %v1726_v63 }
 0x22f   : > { %v1432_v9 = vsel %vm3757_vm1, %v1406_v59, %v1431_v6  ;;  %1728 = vst [vmem:[%s3460_s15] sm:$0x4] %v1727_v7  ;;  %v1702_v10 = vpop.permute.xlu0 %1701  ;;  %2142 = vrot.lane.b32.xlu1 %v3539_v47, %s3307_s25 }
 0x230   : > { %1433 = vst [vmem:[%s3460_s15] sm:$0x2] %v1432_v9  ;;  %v1434_v11 = vld [vmem:[%s3460_s15 + $0x4] sm:$0x2]  ;;  %v1730_v17 = vsel %vm3751_vm0, %v1702_v10, %v1729_v5 }
 0x231   : > { %v1435_v18 = vsel %vm3757_vm1, %v1408_v60, %v1434_v11  ;;  %1731 = vst [vmem:[%s3460_s15 + $0x4] sm:$0x4] %v1730_v17  ;;  %v1995_v19 = vpop.permute.xlu1 %1994  ;;  %2144 = vrot.lane.b32.xlu0 %v3550_v58, %s3307_s25 }
 0x232   : > { %1436 = vst [vmem:[%s3460_s15 + $0x4] sm:$0x2] %v1435_v18 }
 0x233   : > { %v1997_v20 = vpop.permute.xlu0 %1996  ;;  %2437 = vrot.lane.b32.xlu1 %v3539_v47, %s3308_s26 }
 0x235   : > { %v2289_v25 = vpop.permute.xlu1 %2288  ;;  %2439 = vrot.lane.b32.xlu0 %v3550_v58, %s3308_s26 }
 0x236   : > { %v2020_v29 = vld [vmem:[%s3460_s15] sm:$0x4]  ;;  %v2316_v30 = vsel %vm3785_vm5, %v2289_v25, %v2315_v23 }
 0x237   : > { %v2021_v31 = vsel %vm3791_vm6, %v1995_v19, %v2020_v29  ;;  %2317 = vst [vmem:[%s3460_s15] sm:$0x8] %v2316_v30  ;;  %v2291_v32 = vpop.permute.xlu0 %2290  ;;  %2731 = vrot.lane.b32.xlu1 %v3539_v47, %s3309_s28  ;;  %v1735_v29 = vld [vmem:[%s3460_s15 + $0xc] sm:$0x4] }
 0x238   : > { %2022 = vst [vmem:[%s3460_s15] sm:$0x4] %v2021_v31  ;;  %v2023_v33 = vld [vmem:[%s3460_s15 + $0x4] sm:$0x4]  ;;  %v2319_v34 = vsel %vm3785_vm5, %v2291_v32, %v2318_v26  ;;  %v1738_v32 = vld [vmem:[%s3460_s15 + $0x10] sm:$0x4] }
 0x239   : > { %v2024_v35 = vsel %vm3791_vm6, %v1997_v20, %v2023_v33  ;;  %2320 = vst [vmem:[%s3460_s15 + $0x4] sm:$0x8] %v2319_v34  ;;  %v2584_v36 = vpop.permute.xlu1 %2583  ;;  %2733 = vrot.lane.b32.xlu0 %v3550_v58, %s3309_s28  ;;  %v1732_v20 = vld [vmem:[%s3460_s15 + $0x8] sm:$0x4] }
 0x23a   : > { %2025 = vst [vmem:[%s3460_s15 + $0x4] sm:$0x4] %v2024_v35  ;;  %v1741_v35 = vld [vmem:[%s3460_s15 + $0x14] sm:$0x4] }
 0x23b   : > { %v2586_v47 = vpop.permute.xlu0 %2585  ;;  %968 = vrot.lane.b32.xlu1 %v3554_v62, %s3300_s14 }
 0x23d   : > { %v821_v39 = vpop.permute.xlu1 %820  ;;  %970 = vrot.lane.b32.xlu0 %v3565_v8, %s3300_s14 }
 0x23e   : > { %v2609_v58 = vld [vmem:[%s3460_s15] sm:$0x8]  ;;  %v849_v41 = vsel %vm3713_vm9, %v821_v39, %v848_v40 }
 0x23f   : > { %v2610_v42 = vsel %vm3819_vm8, %v2584_v36, %v2609_v58  ;;  %850 = vst [vmem:[%s3460_s15 + $0x8] sm:$0x1] %v849_v41  ;;  %v823_v43 = vpop.permute.xlu0 %822  ;;  %972 = vrot.lane.b32.xlu1 %v3557_v0, %s3300_s14 }
 0x240   : > { %2611 = vst [vmem:[%s3460_s15] sm:$0x8] %v2610_v42  ;;  %v2612_v45 = vld [vmem:[%s3460_s15 + $0x4] sm:$0x8]  ;;  %v852_v46 = vsel %vm3713_vm9, %v823_v43, %v851_v44 }
 0x241   : > { %v2613_v48 = vsel %vm3819_vm8, %v2586_v47, %v2612_v45  ;;  %853 = vst [vmem:[%s3460_s15 + $0xc] sm:$0x1] %v852_v46  ;;  %v825_v49 = vpop.permute.xlu1 %824  ;;  %974 = vrot.lane.b32.xlu0 %v3573_v14, %s3300_s14 }
 0x242   : > { %2614 = vst [vmem:[%s3460_s15 + $0x4] sm:$0x8] %v2613_v48  ;;  %v855_v51 = vsel %vm3713_vm9, %v825_v49, %v854_v50  ;;  %v2321_v50 = vld [vmem:[%s3460_s15 + $0x8] sm:$0x8] }
 0x243   : > { %856 = vst [vmem:[%s3460_s15 + $0x10] sm:$0x1] %v855_v51  ;;  %v827_v1 = vpop.permute.xlu0 %826  ;;  %1263 = vrot.lane.b32.xlu1 %v3554_v62, %s3304_s16 }
 0x244   : > { %v858_v13 = vsel %vm3713_vm9, %v827_v1, %v857_v3 }
 0x245   : > { %859 = vst [vmem:[%s3460_s15 + $0x14] sm:$0x1] %v858_v13  ;;  %v1115_v16 = vpop.permute.xlu1 %1114  ;;  %1265 = vrot.lane.b32.xlu0 %v3565_v8, %s3304_s16 }
 0x246   : > { %v1144_v28 = vsel %vm3727_vm12, %v1115_v16, %v1143_v12  ;;  %v2324_v12 = vld [vmem:[%s3460_s15 + $0xc] sm:$0x8] }
 0x247   : > { %1145 = vst [vmem:[%s3460_s15 + $0x8] sm:$0x2] %v1144_v28  ;;  %v1117_v37 = vpop.permute.xlu0 %1116  ;;  %1267 = vrot.lane.b32.xlu1 %v3557_v0, %s3304_s16 }
 0x248   : > { %v1147_v54 = vsel %vm3727_vm12, %v1117_v37, %v1146_v27  ;;  %v2327_v27 = vld [vmem:[%s3460_s15 + $0x10] sm:$0x8] }
 0x249   : > { %1148 = vst [vmem:[%s3460_s15 + $0xc] sm:$0x2] %v1147_v54  ;;  %v1119_v55 = vpop.permute.xlu1 %1118  ;;  %1269 = vrot.lane.b32.xlu0 %v3573_v14, %s3304_s16 }
 0x24a   : > { %v1150_v59 = vsel %vm3727_vm12, %v1119_v55, %v1149_v52  ;;  %v2330_v52 = vld [vmem:[%s3460_s15 + $0x14] sm:$0x8] }
 0x24b   : > { %1151 = vst [vmem:[%s3460_s15 + $0x10] sm:$0x2] %v1150_v59  ;;  %v1121_v60 = vpop.permute.xlu0 %1120  ;;  %1557 = vrot.lane.b32.xlu1 %v3554_v62, %s3305_s17 }
 0x24c   : > { %v1153_v63 = vsel %vm3727_vm12, %v1121_v60, %v1152_v57 }
 0x24d   : > { %1154 = vst [vmem:[%s3460_s15 + $0x14] sm:$0x2] %v1153_v63  ;;  %v1410_v4 = vpop.permute.xlu1 %1409  ;;  %1559 = vrot.lane.b32.xlu0 %v3565_v8, %s3305_s17 }
 0x24e   : > { %v1437_v5 = vld [vmem:[%s3460_s15 + $0x8] sm:$0x2] }
 0x24f   : > { %v1438_v6 = vsel %vm3757_vm1, %v1410_v4, %v1437_v5  ;;  %v1412_v7 = vpop.permute.xlu0 %1411  ;;  %1561 = vrot.lane.b32.xlu1 %v3557_v0, %s3305_s17 }
 0x250   : > { %1439 = vst [vmem:[%s3460_s15 + $0x8] sm:$0x2] %v1438_v6  ;;  %v1440_v9 = vld [vmem:[%s3460_s15 + $0xc] sm:$0x2] }
 0x251   : > { %v1441_v10 = vsel %vm3757_vm1, %v1412_v7, %v1440_v9  ;;  %v1414_v11 = vpop.permute.xlu1 %1413  ;;  %1563 = vrot.lane.b32.xlu0 %v3573_v14, %s3305_s17 }
 0x252   : > { %1442 = vst [vmem:[%s3460_s15 + $0xc] sm:$0x2] %v1441_v10  ;;  %v1443_v17 = vld [vmem:[%s3460_s15 + $0x10] sm:$0x2] }
 0x253   : > { %v1444_v18 = vsel %vm3757_vm1, %v1414_v11, %v1443_v17  ;;  %v1416_v19 = vpop.permute.xlu0 %1415  ;;  %1852 = vrot.lane.b32.xlu1 %v3554_v62, %s3306_s19 }
 0x254   : > { %1445 = vst [vmem:[%s3460_s15 + $0x10] sm:$0x2] %v1444_v18  ;;  %v1446_v23 = vld [vmem:[%s3460_s15 + $0x14] sm:$0x2]  ;;  %v860_v18 = vld [vmem:[%s3460_s15 + $0x18] sm:$0x1] }
 0x255   : > { %v1447_v25 = vsel %vm3757_vm1, %v1416_v19, %v1446_v23  ;;  %v1704_v26 = vpop.permute.xlu1 %1703  ;;  %1854 = vrot.lane.b32.xlu0 %v3565_v8, %s3306_s19  ;;  %v863_v23 = vld [vmem:[%s3460_s15 + $0x1c] sm:$0x1] }
 0x256   : > { %1448 = vst [vmem:[%s3460_s15 + $0x14] sm:$0x2] %v1447_v25  ;;  %v1733_v30 = vsel %vm3751_vm0, %v1704_v26, %v1732_v20  ;;  %v1155_v25 = vld [vmem:[%s3460_s15 + $0x18] sm:$0x2] }
 0x257   : > { %1734 = vst [vmem:[%s3460_s15 + $0x8] sm:$0x4] %v1733_v30  ;;  %v1706_v31 = vpop.permute.xlu0 %1705  ;;  %1856 = vrot.lane.b32.xlu1 %v3557_v0, %s3306_s19  ;;  %v1158_v30 = vld [vmem:[%s3460_s15 + $0x1c] sm:$0x2] }
 0x258   : > { %v1736_v33 = vsel %vm3751_vm0, %v1706_v31, %v1735_v29 }
 0x259   : > { %1737 = vst [vmem:[%s3460_s15 + $0xc] sm:$0x4] %v1736_v33  ;;  %v1708_v34 = vpop.permute.xlu1 %1707  ;;  %1858 = vrot.lane.b32.xlu0 %v3573_v14, %s3306_s19 }
 0x25a   : > { %v1739_v36 = vsel %vm3751_vm0, %v1708_v34, %v1738_v32 }
 0x25b   : > { %1740 = vst [vmem:[%s3460_s15 + $0x10] sm:$0x4] %v1739_v36  ;;  %v1710_v47 = vpop.permute.xlu0 %1709  ;;  %2146 = vrot.lane.b32.xlu1 %v3554_v62, %s3307_s25  ;;  %v1744_v36 = vld [vmem:[%s3460_s15 + $0x18] sm:$0x4] }
 0x25c   : > { %v1742_v39 = vsel %vm3751_vm0, %v1710_v47, %v1741_v35 }
 0x25d   : > { %1743 = vst [vmem:[%s3460_s15 + $0x14] sm:$0x4] %v1742_v39  ;;  %v1999_v40 = vpop.permute.xlu1 %1998  ;;  %2148 = vrot.lane.b32.xlu0 %v3565_v8, %s3307_s25  ;;  %v1747_v39 = vld [vmem:[%s3460_s15 + $0x1c] sm:$0x4] }
 0x25e   : > { %v2026_v58 = vld [vmem:[%s3460_s15 + $0x8] sm:$0x4] }
 0x25f   : > { %v2027_v41 = vsel %vm3791_vm6, %v1999_v40, %v2026_v58  ;;  %v2001_v42 = vpop.permute.xlu0 %2000  ;;  %2150 = vrot.lane.b32.xlu1 %v3557_v0, %s3307_s25 }
 0x260   : > { %2028 = vst [vmem:[%s3460_s15 + $0x8] sm:$0x4] %v2027_v41  ;;  %v2029_v43 = vld [vmem:[%s3460_s15 + $0xc] sm:$0x4] }
 0x261   : > { %v2030_v44 = vsel %vm3791_vm6, %v2001_v42, %v2029_v43  ;;  %v2003_v45 = vpop.permute.xlu1 %2002  ;;  %2152 = vrot.lane.b32.xlu0 %v3573_v14, %s3307_s25 }
 0x262   : > { %2031 = vst [vmem:[%s3460_s15 + $0xc] sm:$0x4] %v2030_v44  ;;  %v2032_v46 = vld [vmem:[%s3460_s15 + $0x10] sm:$0x4] }
 0x263   : > { %v2033_v48 = vsel %vm3791_vm6, %v2003_v45, %v2032_v46  ;;  %v2005_v49 = vpop.permute.xlu0 %2004  ;;  %2441 = vrot.lane.b32.xlu1 %v3554_v62, %s3308_s26 }
 0x264   : > { %2034 = vst [vmem:[%s3460_s15 + $0x10] sm:$0x4] %v2033_v48  ;;  %v2035_v51 = vld [vmem:[%s3460_s15 + $0x14] sm:$0x4]  ;;  %v2333_v48 = vld [vmem:[%s3460_s15 + $0x18] sm:$0x8] }
 0x265   : > { %v2036_v1 = vsel %vm3791_vm6, %v2005_v49, %v2035_v51  ;;  %v2293_v3 = vpop.permute.xlu1 %2292  ;;  %2443 = vrot.lane.b32.xlu0 %v3565_v8, %s3308_s26 }
 0x266   : > { %2037 = vst [vmem:[%s3460_s15 + $0x14] sm:$0x4] %v2036_v1  ;;  %v2322_v13 = vsel %vm3785_vm5, %v2293_v3, %v2321_v50  ;;  %v2336_v50 = vld [vmem:[%s3460_s15 + $0x1c] sm:$0x8] }
 0x267   : > { %2323 = vst [vmem:[%s3460_s15 + $0x8] sm:$0x8] %v2322_v13  ;;  %v2295_v16 = vpop.permute.xlu0 %2294  ;;  %2445 = vrot.lane.b32.xlu1 %v3557_v0, %s3308_s26 }
 0x268   : > { %v2325_v28 = vsel %vm3785_vm5, %v2295_v16, %v2324_v12 }
 0x269   : > { %2326 = vst [vmem:[%s3460_s15 + $0xc] sm:$0x8] %v2325_v28  ;;  %v2297_v37 = vpop.permute.xlu1 %2296  ;;  %2447 = vrot.lane.b32.xlu0 %v3573_v14, %s3308_s26 }
 0x26a   : > { %v2328_v54 = vsel %vm3785_vm5, %v2297_v37, %v2327_v27  ;;  %v988_v37 = vld [vmem:[%s3544_s18] sm:$0x1] }
 0x26b   : > { %2329 = vst [vmem:[%s3460_s15 + $0x10] sm:$0x8] %v2328_v54  ;;  %v2299_v55 = vpop.permute.xlu0 %2298  ;;  %2735 = vrot.lane.b32.xlu1 %v3554_v62, %s3309_s28 }
 0x26c   : > { %v2331_v57 = vsel %vm3785_vm5, %v2299_v55, %v2330_v52 }
 0x26d   : > { %2332 = vst [vmem:[%s3460_s15 + $0x14] sm:$0x8] %v2331_v57  ;;  %v2588_v59 = vpop.permute.xlu1 %2587  ;;  %2737 = vrot.lane.b32.xlu0 %v3565_v8, %s3309_s28  ;;  %v991_v57 = vld [vmem:[%s3544_s18 + $0x4] sm:$0x1] }
 0x26e   : > { %v2615_v60 = vld [vmem:[%s3460_s15 + $0x8] sm:$0x8] }
 0x26f   : > { %v2616_v63 = vsel %vm3819_vm8, %v2588_v59, %v2615_v60  ;;  %v2590_v4 = vpop.permute.xlu0 %2589  ;;  %976 = vrot.lane.b32.xlu1 %v3576_v15, %s3300_s14  ;;  %v1283_v59 = vld [vmem:[%s3544_s18] sm:$0x2] }
 0x270   : > { %2617 = vst [vmem:[%s3460_s15 + $0x8] sm:$0x8] %v2616_v63  ;;  %v2618_v62 = vld [vmem:[%s3460_s15 + $0xc] sm:$0x8] }
 0x271   : > { %v2619_v5 = vsel %vm3819_vm8, %v2590_v4, %v2618_v62  ;;  %v2592_v6 = vpop.permute.xlu1 %2591  ;;  %978 = vrot.lane.b32.xlu0 %v3583_v53, %s3300_s14  ;;  %s3042_s14 = sshll.u32 %s3285_s22, 9 }
 0x272   : > { %2620 = vst [vmem:[%s3460_s15 + $0xc] sm:$0x8] %v2619_v5  ;;  %v2621_v8 = vld [vmem:[%s3460_s15 + $0x10] sm:$0x8]  ;;  %s4089_s9 = scalar_lea.hbm %s4405_s3, %s3042_s14  ;;  %v1286_v5 = vld [vmem:[%s3544_s18 + $0x4] sm:$0x2] }
 0x273   : > { %v2622_v7 = vsel %vm3819_vm8, %v2592_v6, %v2621_v8  ;;  %v2594_v9 = vpop.permute.xlu0 %2593  ;;  %1271 = vrot.lane.b32.xlu1 %v3576_v15, %s3304_s16 }
 0x274   : > { %2623 = vst [vmem:[%s3460_s15 + $0x10] sm:$0x8] %v2622_v7  ;;  %v2624_v10 = vld [vmem:[%s3460_s15 + $0x14] sm:$0x8] }
 0x275   : > { %v2625_v11 = vsel %vm3819_vm8, %v2594_v9, %v2624_v10  ;;  %v829_v17 = vpop.permute.xlu1 %828  ;;  %1273 = vrot.lane.b32.xlu0 %v3583_v53, %s3304_s16  ;;  %s3185_s16 = sshll.u32 %s3310_s13, 4  ;;  %s3186_s16 = int_to_ptr.vmem [resolvable:$false] %s3185_s16 }
 0x276   : > { %2626 = vst [vmem:[%s3460_s15 + $0x14] sm:$0x8] %v2625_v11  ;;  %v861_v19 = vsel %vm3713_vm9, %v829_v17, %v860_v18  ;;  %p3188_p6 = scmp.lt.s32.totalorder %s4091_s30, %s3186_s16 }
 0x277   : > { %862 = vst [vmem:[%s3460_s15 + $0x18] sm:$0x1] %v861_v19  ;;  %1565 = vrot.lane.b32.xlu1 %v3576_v15, %s3305_s17  ;;  %v831_v20 = vpop.permute.xlu0 %830 }
 0x278   : > { %v864_v26 = vsel %vm3713_vm9, %v831_v20, %v863_v23 }
 0x279   : > { %865 = vst [vmem:[%s3460_s15 + $0x1c] sm:$0x1] %v864_v26  ;;  %v1123_v29 = vpop.permute.xlu1 %1122  ;;  %1567 = vrot.lane.b32.xlu0 %v3583_v53, %s3305_s17  ;;  %s3187_s17 = scalar_lea.vmem %s3186_s16, 1024 }
 0x27a   : > { %v1156_v31 = vsel %vm3727_vm12, %v1123_v29, %v1155_v25  ;;  %p3189_p7 = scmp.lt.s32.totalorder %s3187_s17, %s3181_s11 }
 0x27b   : > { %1157 = vst [vmem:[%s3460_s15 + $0x18] sm:$0x2] %v1156_v31  ;;  %1860 = vrot.lane.b32.xlu1 %v3576_v15, %s3306_s19  ;;  %v1125_v32 = vpop.permute.xlu0 %1124 }
 0x27c   : > { %v1159_v33 = vsel %vm3727_vm12, %v1125_v32, %v1158_v30  ;;  %p3190_p8 = por %p3189_p7, %p3188_p6 }
 0x27d   : > { %1160 = vst [vmem:[%s3460_s15 + $0x1c] sm:$0x2] %v1159_v33  ;;  %v1418_v34 = vpop.permute.xlu1 %1417  ;;  %1862 = vrot.lane.b32.xlu0 %v3583_v53, %s3306_s19 }
 0x27e   : > { %p3191_p10 = pnand %p3190_p8, %p3184_p5 }
 0x27f   : > { %2449 = vrot.lane.b32.xlu1 %v3576_v15, %s3308_s26  ;;  %v1420_v35 = vpop.permute.xlu0 %1419 }
 0x281   : > { %v1712_v47 = vpop.permute.xlu1 %1711  ;;  %2451 = vrot.lane.b32.xlu0 %v3583_v53, %s3308_s26 }
 0x282   : > { %v1449_v40 = vld [vmem:[%s3460_s15 + $0x18] sm:$0x2]  ;;  %v1745_v58 = vsel %vm3751_vm0, %v1712_v47, %v1744_v36 }
 0x283   : > { %v1450_v41 = vsel %vm3757_vm1, %v1418_v34, %v1449_v40  ;;  %1746 = vst [vmem:[%s3460_s15 + $0x18] sm:$0x4] %v1745_v58  ;;  %2739 = vrot.lane.b32.xlu1 %v3557_v0, %s3309_s28  ;;  %v1714_v42 = vpop.permute.xlu0 %1713 }
 0x284   : > { %1451 = vst [vmem:[%s3460_s15 + $0x18] sm:$0x2] %v1450_v41  ;;  %v1452_v43 = vld [vmem:[%s3460_s15 + $0x1c] sm:$0x2]  ;;  %v1748_v44 = vsel %vm3751_vm0, %v1714_v42, %v1747_v39 }
 0x285   : > { %v1453_v45 = vsel %vm3757_vm1, %v1420_v35, %v1452_v43  ;;  %1749 = vst [vmem:[%s3460_s15 + $0x1c] sm:$0x4] %v1748_v44  ;;  %v2007_v46 = vpop.permute.xlu1 %2006  ;;  %2741 = vrot.lane.b32.xlu0 %v3573_v14, %s3309_s28 }
 0x286   : > { %1454 = vst [vmem:[%s3460_s15 + $0x1c] sm:$0x2] %v1453_v45 }
 0x287   : > { %2154 = vrot.lane.b32.xlu1 %v3576_v15, %s3307_s25  ;;  %v2009_v0 = vpop.permute.xlu0 %2008 }
 0x289   : > { %v2301_v49 = vpop.permute.xlu1 %2300  ;;  %2156 = vrot.lane.b32.xlu0 %v3583_v53, %s3307_s25 }
 0x28a   : > { %v2038_v51 = vld [vmem:[%s3460_s15 + $0x18] sm:$0x4]  ;;  %v2334_v1 = vsel %vm3785_vm5, %v2301_v49, %v2333_v48 }
 0x28b   : > { %v2039_v14 = vsel %vm3791_vm6, %v2007_v46, %v2038_v51  ;;  %2335 = vst [vmem:[%s3460_s15 + $0x18] sm:$0x8] %v2334_v1  ;;  %2743 = vrot.lane.b32.xlu1 %v3576_v15, %s3309_s28  ;;  %v2303_v3 = vpop.permute.xlu0 %2302 }
 0x28c   : > { %2040 = vst [vmem:[%s3460_s15 + $0x18] sm:$0x4] %v2039_v14  ;;  %v2041_v12 = vld [vmem:[%s3460_s15 + $0x1c] sm:$0x4]  ;;  %v2337_v13 = vsel %vm3785_vm5, %v2303_v3, %v2336_v50 }
 0x28d   : > { %v2042_v16 = vsel %vm3791_vm6, %v2009_v0, %v2041_v12  ;;  %2338 = vst [vmem:[%s3460_s15 + $0x1c] sm:$0x8] %v2337_v13  ;;  %v2596_v27 = vpop.permute.xlu1 %2595  ;;  %2745 = vrot.lane.b32.xlu0 %v3583_v53, %s3309_s28 }
 0x28e   : > { %2043 = vst [vmem:[%s3460_s15 + $0x1c] sm:$0x4] %v2042_v16 }
 0x28f   : > { %v2598_v15 = vpop.permute.xlu0 %2597 }
 0x291   : > { %v965_v28 = vpop.permute.xlu1 %964 }
 0x292   : > { %v2627_v52 = vld [vmem:[%s3460_s15 + $0x18] sm:$0x8]  ;;  %v989_v54 = vsel %vm3713_vm9, %v965_v28, %v988_v37 }
 0x293   : > { %v2628_v55 = vsel %vm3819_vm8, %v2596_v27, %v2627_v52  ;;  %990 = vst [vmem:[%s3544_s18] sm:$0x1] %v989_v54  ;;  %v967_v53 = vpop.permute.xlu0 %966 }
 0x294   : > { %2629 = vst [vmem:[%s3460_s15 + $0x18] sm:$0x8] %v2628_v55  ;;  %v2630_v60 = vld [vmem:[%s3460_s15 + $0x1c] sm:$0x8]  ;;  %v992_v63 = vsel %vm3713_vm9, %v967_v53, %v991_v57 }
 0x295   : > { %v2631_v4 = vsel %vm3819_vm8, %v2598_v15, %v2630_v60  ;;  %993 = vst [vmem:[%s3544_s18 + $0x4] sm:$0x1] %v992_v63  ;;  %v1260_v62 = vpop.permute.xlu1 %1259 }
 0x296   : > { %2632 = vst [vmem:[%s3460_s15 + $0x1c] sm:$0x8] %v2631_v4  ;;  %v1284_v6 = vsel %vm3727_vm12, %v1260_v62, %v1283_v59 }
 0x297   : > { %1285 = vst [vmem:[%s3544_s18] sm:$0x2] %v1284_v6  ;;  %v1262_v8 = vpop.permute.xlu0 %1261 }
 0x298   : > { %3194 = shalt.err (!%p3191_p10)
}
 0x299   : > { %s3195_s15 = scalar_lea.hbm %s4089_s9, 512  ;;  %s3199_s26 = scalar_lea.hbm %s4405_s3, 1024 }
 0x29a   : > { %p3196_p11 = scmp.ne.s32.totalorder %s4089_s9, %s3195_s15  ;;  %p3200_p1 = scmp.lt.u32.totalorder %s4089_s9, %s4405_s3 }
 0x29b   : > { %p3201_p2 = scmp.lt.u32.totalorder %s3199_s26, %s3195_s15  ;;  %p3203_p4 = scmp.lt.u32.totalorder %s3195_s15, %s4089_s9 }
 0x29c   : > { %p3197_p12 = pnand %p3196_p11, %p3382_p9 }
 0x29d   : > { %p3202_p3 = por %p3201_p2, %p3200_p1 }
 0x29e   : > { %p3198_p0 = pneg %p3197_p12 }
 0x29f   : > { %p3204_p5 = por %p3203_p4, %p3202_p3 }
 0x2a1   : > { %p3205_p6 = pnand %p3204_p5, %p3198_p0 }
 0x2a3   : > { %3208 = shalt.err (!%p3205_p6)
}
 0x2a4   : > { %s3311_s8 = smov 64   ;;  %s3312_s11 = smov 4   ;;  %v1287_v7 = vsel %vm3727_vm12, %v1262_v8, %v1286_v5  ;;  %v1554_v9 = vpop.permute.xlu1 %1553  ;;  %v1556_v10 = vpop.permute.xlu0 %1555  ;;  %v1872_v11 = vld [vmem:[%s3544_s18] sm:$0x4]  ;;  %v1875_v18 = vld [vmem:[%s3544_s18 + $0x4] sm:$0x4] }
 0x2a5   : > { %3085 = dma.vmem_to_hbm [thread:$0]  (%p3382_p9), %s4091_s30, 512, %s4089_s9, %s2780_s10, %s3311_s8, %s3311_s8, %s3312_s11  }
 0x2a6   : > { %1288 = vst [vmem:[%s3544_s18 + $0x4] sm:$0x2] %v1287_v7  ;;  %v1577_v19 = vld [vmem:[%s3544_s18] sm:$0x2]  ;;  %v2461_v33 = vld [vmem:[%s3544_s18] sm:$0x8]  ;;  %s4346_s13 = scalar_lea.hbm %s4406_s4, %s3042_s14 }
 0x2a7   : > { %v1578_v23 = vsel %vm3757_vm1, %v1554_v9, %v1577_v19  ;;  %v2464_v35 = vld [vmem:[%s3544_s18 + $0x4] sm:$0x8]  ;;  %v994_v46 = vld [vmem:[%s3544_s18 + $0x8] sm:$0x1]  ;;  %v997_v51 = vld [vmem:[%s3544_s18 + $0xc] sm:$0x1] }
 0x2a8   : > { %v1849_v17 = vpop.permute.xlu1 %1848  ;;  %v1851_v25 = vpop.permute.xlu0 %1850  ;;  %1579 = vst [vmem:[%s3544_s18] sm:$0x2] %v1578_v23  ;;  %v1000_v13 = vld [vmem:[%s3544_s18 + $0x10] sm:$0x1]  ;;  %v1003_v15 = vld [vmem:[%s3544_s18 + $0x14] sm:$0x1]  ;;  %s2816_s30 = sshll.u32 %s3544_s18, 4  ;;  %s4348_s30 = int_to_ptr.vmem [resolvable:$true] %s2816_s30 }
 0x2a9   : > { %v1873_v20 = vsel %vm3751_vm0, %v1849_v17, %v1872_v11  ;;  %v1876_v29 = vsel %vm3751_vm0, %v1851_v25, %v1875_v18  ;;  %v1289_v28 = vld [vmem:[%s3544_s18 + $0x8] sm:$0x2]  ;;  %v1292_v54 = vld [vmem:[%s3544_s18 + $0xc] sm:$0x2]  ;;  %v1295_v57 = vld [vmem:[%s3544_s18 + $0x10] sm:$0x2] }
 0x2aa   : > { %1874 = vst [vmem:[%s3544_s18] sm:$0x4] %v1873_v20  ;;  %1877 = vst [vmem:[%s3544_s18 + $0x4] sm:$0x4] %v1876_v29  ;;  %v1298_v63 = vld [vmem:[%s3544_s18 + $0x14] sm:$0x2]  ;;  %s2785_s16 = scalar_lea.sflag [#allocation9], %s3441_s12 }
 0x2ab   : > { %v1878_v23 = vld [vmem:[%s3544_s18 + $0x8] sm:$0x4]  ;;  %s3209_s17 = scalar_lea.vmem %s4348_s30, 512  ;;  %s3313_s22 = smov [#allocation8]  }
 0x2ac   : > { %v2143_v31 = vpop.permute.xlu1 %2142  ;;  %v2145_v32 = vpop.permute.xlu0 %2144  ;;  %p3210_p7 = scmp.ne.s32.totalorder %s4348_s30, %s3209_s17  ;;  %s3213_s15 = sshll.u32 %s3313_s22, 4  ;;  %s3214_s15 = int_to_ptr.vmem [resolvable:$false] %s3213_s15 }
 0x2ad   : > { %v1580_v26 = vld [vmem:[%s3544_s18 + $0x4] sm:$0x2]  ;;  %s3215_s14 = scalar_lea.vmem %s3214_s15, 1024  ;;  %p3216_p11 = scmp.lt.s32.totalorder %s4348_s30, %s3214_s15 }
 0x2ae   : > { %v1581_v30 = vsel %vm3757_vm1, %v1556_v10, %v1580_v26  ;;  %p3211_p8 = pnand %p3210_p7, %p3382_p9  ;;  %p3217_p12 = scmp.lt.s32.totalorder %s3215_s14, %s3209_s17 }
 0x2af   : > { %1582 = vst [vmem:[%s3544_s18 + $0x4] sm:$0x2] %v1581_v30  ;;  %v1881_v30 = vld [vmem:[%s3544_s18 + $0xc] sm:$0x4] }
 0x2b0   : > { %v2438_v34 = vpop.permute.xlu1 %2437  ;;  %v2440_v40 = vpop.permute.xlu0 %2439  ;;  %p3212_p10 = pneg %p3211_p8  ;;  %p3218_p0 = por %p3217_p12, %p3216_p11 }
 0x2b1   : > { %v2166_v36 = vld [vmem:[%s3544_s18] sm:$0x4]  ;;  %v2462_v47 = vsel %vm3785_vm5, %v2438_v34, %v2461_v33  ;;  %v2169_v58 = vld [vmem:[%s3544_s18 + $0x4] sm:$0x4]  ;;  %v2465_v41 = vsel %vm3785_vm5, %v2440_v40, %v2464_v35  ;;  %v1884_v33 = vld [vmem:[%s3544_s18 + $0x10] sm:$0x4] }
 0x2b2   : > { %v2167_v39 = vsel %vm3791_vm6, %v2143_v31, %v2166_v36  ;;  %2463 = vst [vmem:[%s3544_s18] sm:$0x8] %v2462_v47  ;;  %v2170_v42 = vsel %vm3791_vm6, %v2145_v32, %v2169_v58  ;;  %2466 = vst [vmem:[%s3544_s18 + $0x4] sm:$0x8] %v2465_v41  ;;  %v1887_v36 = vld [vmem:[%s3544_s18 + $0x14] sm:$0x4]  ;;  %p3219_p1 = pnand %p3218_p0, %p3212_p10 }
 0x2b3   : > { %2168 = vst [vmem:[%s3544_s18] sm:$0x4] %v2167_v39  ;;  %2171 = vst [vmem:[%s3544_s18 + $0x4] sm:$0x4] %v2170_v42 }
 0x2b4   : > { %v2732_v43 = vpop.permute.xlu1 %2731  ;;  %v2734_v44 = vpop.permute.xlu0 %2733 }
 0x2b8   : > { %v969_v45 = vpop.permute.xlu1 %968  ;;  %v971_v50 = vpop.permute.xlu0 %970 }
 0x2b9   : > { %v2755_v0 = vld [vmem:[%s3544_s18] sm:$0x8]  ;;  %v995_v48 = vsel %vm3713_vm9, %v969_v45, %v994_v46  ;;  %v2758_v1 = vld [vmem:[%s3544_s18 + $0x4] sm:$0x8]  ;;  %v998_v14 = vsel %vm3713_vm9, %v971_v50, %v997_v51  ;;  %v2467_v50 = vld [vmem:[%s3544_s18 + $0x8] sm:$0x8] }
 0x2ba   : > { %v2756_v49 = vsel %vm3819_vm8, %v2732_v43, %v2755_v0  ;;  %996 = vst [vmem:[%s3544_s18 + $0x8] sm:$0x1] %v995_v48  ;;  %v2759_v3 = vsel %vm3819_vm8, %v2734_v44, %v2758_v1  ;;  %999 = vst [vmem:[%s3544_s18 + $0xc] sm:$0x1] %v998_v14 }
 0x2bb   : > { %2757 = vst [vmem:[%s3544_s18] sm:$0x8] %v2756_v49  ;;  %2760 = vst [vmem:[%s3544_s18 + $0x4] sm:$0x8] %v2759_v3  ;;  %v2470_v3 = vld [vmem:[%s3544_s18 + $0xc] sm:$0x8] }
 0x2bc   : > { %v973_v12 = vpop.permute.xlu1 %972  ;;  %v975_v27 = vpop.permute.xlu0 %974 }
 0x2bd   : > { %v1001_v16 = vsel %vm3713_vm9, %v973_v12, %v1000_v13  ;;  %v1004_v37 = vsel %vm3713_vm9, %v975_v27, %v1003_v15 }
 0x2be   : > { %1002 = vst [vmem:[%s3544_s18 + $0x10] sm:$0x1] %v1001_v16  ;;  %1005 = vst [vmem:[%s3544_s18 + $0x14] sm:$0x1] %v1004_v37  ;;  %v2473_v16 = vld [vmem:[%s3544_s18 + $0x10] sm:$0x8] }
 0x2c0   : > { %v1264_v52 = vpop.permute.xlu1 %1263  ;;  %v1266_v53 = vpop.permute.xlu0 %1265 }
 0x2c1   : > { %v1290_v55 = vsel %vm3727_vm12, %v1264_v52, %v1289_v28  ;;  %v1293_v59 = vsel %vm3727_vm12, %v1266_v53, %v1292_v54  ;;  %v2476_v28 = vld [vmem:[%s3544_s18 + $0x14] sm:$0x8] }
 0x2c2   : > { %1291 = vst [vmem:[%s3544_s18 + $0x8] sm:$0x2] %v1290_v55  ;;  %1294 = vst [vmem:[%s3544_s18 + $0xc] sm:$0x2] %v1293_v59 }
 0x2c4   : > { %v1268_v60 = vpop.permute.xlu1 %1267  ;;  %v1270_v62 = vpop.permute.xlu0 %1269 }
 0x2c5   : > { %v1296_v4 = vsel %vm3727_vm12, %v1268_v60, %v1295_v57  ;;  %v1299_v5 = vsel %vm3727_vm12, %v1270_v62, %v1298_v63  ;;  %v1006_v62 = vld [vmem:[%s3544_s18 + $0x18] sm:$0x1] }
 0x2c6   : > { %1297 = vst [vmem:[%s3544_s18 + $0x10] sm:$0x2] %v1296_v4  ;;  %1300 = vst [vmem:[%s3544_s18 + $0x14] sm:$0x2] %v1299_v5 }
 0x2c8   : > { %v1558_v6 = vpop.permute.xlu1 %1557  ;;  %v1560_v9 = vpop.permute.xlu0 %1559 }
 0x2c9   : > { %v1583_v8 = vld [vmem:[%s3544_s18 + $0x8] sm:$0x2]  ;;  %v1586_v10 = vld [vmem:[%s3544_s18 + $0xc] sm:$0x2] }
 0x2ca   : > { %v1584_v7 = vsel %vm3757_vm1, %v1558_v6, %v1583_v8  ;;  %v1587_v11 = vsel %vm3757_vm1, %v1560_v9, %v1586_v10  ;;  %v1009_v8 = vld [vmem:[%s3544_s18 + $0x1c] sm:$0x1] }
 0x2cb   : > { %1585 = vst [vmem:[%s3544_s18 + $0x8] sm:$0x2] %v1584_v7  ;;  %1588 = vst [vmem:[%s3544_s18 + $0xc] sm:$0x2] %v1587_v11  ;;  %v1301_v7 = vld [vmem:[%s3544_s18 + $0x18] sm:$0x2] }
 0x2cc   : > { %v1562_v17 = vpop.permute.xlu1 %1561  ;;  %v1564_v20 = vpop.permute.xlu0 %1563  ;;  %v1304_v11 = vld [vmem:[%s3544_s18 + $0x1c] sm:$0x2] }
 0x2cd   : > { %v1589_v18 = vld [vmem:[%s3544_s18 + $0x10] sm:$0x2]  ;;  %v1592_v25 = vld [vmem:[%s3544_s18 + $0x14] sm:$0x2] }
 0x2ce   : > { %v1590_v19 = vsel %vm3757_vm1, %v1562_v17, %v1589_v18  ;;  %v1593_v26 = vsel %vm3757_vm1, %v1564_v20, %v1592_v25 }
 0x2cf   : > { %1591 = vst [vmem:[%s3544_s18 + $0x10] sm:$0x2] %v1590_v19  ;;  %1594 = vst [vmem:[%s3544_s18 + $0x14] sm:$0x2] %v1593_v26  ;;  %v1893_v26 = vld [vmem:[%s3544_s18 + $0x1c] sm:$0x4] }
 0x2d0   : > { %v1853_v29 = vpop.permute.xlu1 %1852  ;;  %v1855_v32 = vpop.permute.xlu0 %1854 }
 0x2d1   : > { %v1879_v31 = vsel %vm3751_vm0, %v1853_v29, %v1878_v23  ;;  %v1882_v34 = vsel %vm3751_vm0, %v1855_v32, %v1881_v30  ;;  %v1890_v23 = vld [vmem:[%s3544_s18 + $0x18] sm:$0x4]  ;;  %v2479_v32 = vld [vmem:[%s3544_s18 + $0x18] sm:$0x8] }
 0x2d2   : > { %1880 = vst [vmem:[%s3544_s18 + $0x8] sm:$0x4] %v1879_v31  ;;  %1883 = vst [vmem:[%s3544_s18 + $0xc] sm:$0x4] %v1882_v34 }
 0x2d4   : > { %v1857_v35 = vpop.permute.xlu1 %1856  ;;  %v1859_v39 = vpop.permute.xlu0 %1858 }
 0x2d5   : > { %v1885_v47 = vsel %vm3751_vm0, %v1857_v35, %v1884_v33  ;;  %v1888_v40 = vsel %vm3751_vm0, %v1859_v39, %v1887_v36 }
 0x2d6   : > { %1886 = vst [vmem:[%s3544_s18 + $0x10] sm:$0x4] %v1885_v47  ;;  %1889 = vst [vmem:[%s3544_s18 + $0x14] sm:$0x4] %v1888_v40  ;;  %v2482_v47 = vld [vmem:[%s3544_s18 + $0x1c] sm:$0x8] }
 0x2d8   : > { %v2147_v58 = vpop.permute.xlu1 %2146  ;;  %v2149_v43 = vpop.permute.xlu0 %2148 }
 0x2d9   : > { %v2172_v41 = vld [vmem:[%s3544_s18 + $0x8] sm:$0x4]  ;;  %v2175_v44 = vld [vmem:[%s3544_s18 + $0xc] sm:$0x4] }
 0x2da   : > { %v2173_v42 = vsel %vm3791_vm6, %v2147_v58, %v2172_v41  ;;  %v2176_v45 = vsel %vm3791_vm6, %v2149_v43, %v2175_v44 }
 0x2db   : > { %2174 = vst [vmem:[%s3544_s18 + $0x8] sm:$0x4] %v2173_v42  ;;  %2177 = vst [vmem:[%s3544_s18 + $0xc] sm:$0x4] %v2176_v45 }
 0x2dc   : > { %v2151_v46 = vpop.permute.xlu1 %2150  ;;  %v2153_v49 = vpop.permute.xlu0 %2152 }
 0x2dd   : > { %v2178_v0 = vld [vmem:[%s3544_s18 + $0x10] sm:$0x4]  ;;  %v2181_v51 = vld [vmem:[%s3544_s18 + $0x14] sm:$0x4] }
 0x2de   : > { %v2179_v48 = vsel %vm3791_vm6, %v2151_v46, %v2178_v0  ;;  %v2182_v1 = vsel %vm3791_vm6, %v2153_v49, %v2181_v51 }
 0x2df   : > { %2180 = vst [vmem:[%s3544_s18 + $0x10] sm:$0x4] %v2179_v48  ;;  %2183 = vst [vmem:[%s3544_s18 + $0x14] sm:$0x4] %v2182_v1 }
 0x2e0   : > { %v2442_v14 = vpop.permute.xlu1 %2441  ;;  %v2444_v13 = vpop.permute.xlu0 %2443 }
 0x2e1   : > { %v2468_v12 = vsel %vm3785_vm5, %v2442_v14, %v2467_v50  ;;  %v2471_v27 = vsel %vm3785_vm5, %v2444_v13, %v2470_v3 }
 0x2e2   : > { %2469 = vst [vmem:[%s3544_s18 + $0x8] sm:$0x8] %v2468_v12  ;;  %2472 = vst [vmem:[%s3544_s18 + $0xc] sm:$0x8] %v2471_v27 }
 0x2e4   : > { %v2446_v15 = vpop.permute.xlu1 %2445  ;;  %v2448_v52 = vpop.permute.xlu0 %2447 }
 0x2e5   : > { %v2474_v37 = vsel %vm3785_vm5, %v2446_v15, %v2473_v16  ;;  %v2477_v54 = vsel %vm3785_vm5, %v2448_v52, %v2476_v28 }
 0x2e6   : > { %2475 = vst [vmem:[%s3544_s18 + $0x10] sm:$0x8] %v2474_v37  ;;  %2478 = vst [vmem:[%s3544_s18 + $0x14] sm:$0x8] %v2477_v54 }
 0x2e8   : > { %v2736_v55 = vpop.permute.xlu1 %2735  ;;  %v2738_v59 = vpop.permute.xlu0 %2737 }
 0x2e9   : > { %v2761_v53 = vld [vmem:[%s3544_s18 + $0x8] sm:$0x8]  ;;  %v2764_v60 = vld [vmem:[%s3544_s18 + $0xc] sm:$0x8] }
 0x2ea   : > { %v2762_v57 = vsel %vm3819_vm8, %v2736_v55, %v2761_v53  ;;  %v2765_v63 = vsel %vm3819_vm8, %v2738_v59, %v2764_v60 }
 0x2eb   : > { %2763 = vst [vmem:[%s3544_s18 + $0x8] sm:$0x8] %v2762_v57  ;;  %2766 = vst [vmem:[%s3544_s18 + $0xc] sm:$0x8] %v2765_v63 }
 0x2ec   : > { %v977_v4 = vpop.permute.xlu1 %976  ;;  %v979_v6 = vpop.permute.xlu0 %978 }
 0x2ed   : > { %v1007_v5 = vsel %vm3713_vm9, %v977_v4, %v1006_v62  ;;  %v1010_v9 = vsel %vm3713_vm9, %v979_v6, %v1009_v8  ;;  %v2767_v58 = vld [vmem:[%s3544_s18 + $0x10] sm:$0x8]  ;;  %v2770_v43 = vld [vmem:[%s3544_s18 + $0x14] sm:$0x8] }
 0x2ee   : > { %1008 = vst [vmem:[%s3544_s18 + $0x18] sm:$0x1] %v1007_v5  ;;  %1011 = vst [vmem:[%s3544_s18 + $0x1c] sm:$0x1] %v1010_v9 }
 0x2f0   : > { %v1272_v10 = vpop.permute.xlu1 %1271  ;;  %v1274_v18 = vpop.permute.xlu0 %1273 }
 0x2f1   : > { %v1302_v17 = vsel %vm3727_vm12, %v1272_v10, %v1301_v7  ;;  %v1305_v19 = vsel %vm3727_vm12, %v1274_v18, %v1304_v11 }
 0x2f2   : > { %1303 = vst [vmem:[%s3544_s18 + $0x18] sm:$0x2] %v1302_v17  ;;  %1306 = vst [vmem:[%s3544_s18 + $0x1c] sm:$0x2] %v1305_v19 }
 0x2f4   : > { %v1566_v20 = vpop.permute.xlu1 %1565  ;;  %v1568_v56 = vpop.permute.xlu0 %1567 }
 0x2f8   : > { %v1861_v25 = vpop.permute.xlu1 %1860  ;;  %v1863_v22 = vpop.permute.xlu0 %1862 }
 0x2f9   : > { %v1595_v29 = vld [vmem:[%s3544_s18 + $0x18] sm:$0x2]  ;;  %v1891_v30 = vsel %vm3751_vm0, %v1861_v25, %v1890_v23  ;;  %v1598_v33 = vld [vmem:[%s3544_s18 + $0x1c] sm:$0x2]  ;;  %v1894_v34 = vsel %vm3751_vm0, %v1863_v22, %v1893_v26 }
 0x2fa   : > { %v1596_v31 = vsel %vm3757_vm1, %v1566_v20, %v1595_v29  ;;  %1892 = vst [vmem:[%s3544_s18 + $0x18] sm:$0x4] %v1891_v30  ;;  %v1599_v35 = vsel %vm3757_vm1, %v1568_v56, %v1598_v33  ;;  %1895 = vst [vmem:[%s3544_s18 + $0x1c] sm:$0x4] %v1894_v34 }
 0x2fb   : > { %1597 = vst [vmem:[%s3544_s18 + $0x18] sm:$0x2] %v1596_v31  ;;  %1600 = vst [vmem:[%s3544_s18 + $0x1c] sm:$0x2] %v1599_v35 }
 0x2fc   : > { %v2450_v36 = vpop.permute.xlu1 %2449  ;;  %v2452_v40 = vpop.permute.xlu0 %2451 }
 0x2fd   : > { %v2480_v39 = vsel %vm3785_vm5, %v2450_v36, %v2479_v32  ;;  %v2483_v61 = vsel %vm3785_vm5, %v2452_v40, %v2482_v47 }
 0x2fe   : > { %2481 = vst [vmem:[%s3544_s18 + $0x18] sm:$0x8] %v2480_v39  ;;  %2484 = vst [vmem:[%s3544_s18 + $0x1c] sm:$0x8] %v2483_v61 }
 0x300   : > { %v2740_v2 = vpop.permute.xlu1 %2739  ;;  %v2742_v42 = vpop.permute.xlu0 %2741 }
 0x301   : > { %v2768_v41 = vsel %vm3819_vm8, %v2740_v2, %v2767_v58  ;;  %v2771_v44 = vsel %vm3819_vm8, %v2742_v42, %v2770_v43  ;;  %v2184_v45 = vld [vmem:[%s3544_s18 + $0x18] sm:$0x4]  ;;  %v2187_v48 = vld [vmem:[%s3544_s18 + $0x1c] sm:$0x4] }
 0x302   : > { %2769 = vst [vmem:[%s3544_s18 + $0x10] sm:$0x8] %v2768_v41  ;;  %2772 = vst [vmem:[%s3544_s18 + $0x14] sm:$0x8] %v2771_v44 }
 0x304   : > { %v2155_v21 = vpop.permute.xlu1 %2154  ;;  %v2157_v0 = vpop.permute.xlu0 %2156 }
 0x305   : > { %v2185_v46 = vsel %vm3791_vm6, %v2155_v21, %v2184_v45  ;;  %v2188_v49 = vsel %vm3791_vm6, %v2157_v0, %v2187_v48  ;;  %v2773_v51 = vld [vmem:[%s3544_s18 + $0x18] sm:$0x8]  ;;  %v2776_v3 = vld [vmem:[%s3544_s18 + $0x1c] sm:$0x8] }
 0x306   : > { %2186 = vst [vmem:[%s3544_s18 + $0x18] sm:$0x4] %v2185_v46  ;;  %2189 = vst [vmem:[%s3544_s18 + $0x1c] sm:$0x4] %v2188_v49 }
 0x308   : > { %v2744_v50 = vpop.permute.xlu1 %2743  ;;  %v2746_v14 = vpop.permute.xlu0 %2745 }
 0x309   : > { %v2774_v1 = vsel %vm3819_vm8, %v2744_v50, %v2773_v51  ;;  %v2777_v24 = vsel %vm3819_vm8, %v2746_v14, %v2776_v3 }
 0x30a   : > { %2775 = vst [vmem:[%s3544_s18 + $0x18] sm:$0x8] %v2774_v1  ;;  %2778 = vst [vmem:[%s3544_s18 + $0x1c] sm:$0x8] %v2777_v24 }
 0x30b   : > { %3222 = shalt.err (!%p3219_p1)
}
 0x30c   : > { %s3223_s18 = scalar_lea.hbm %s4346_s13, 512  ;;  %s3227_s26 = scalar_lea.hbm %s4406_s4, 1024 }
 0x30d   : > { %p3224_p2 = scmp.ne.s32.totalorder %s4346_s13, %s3223_s18  ;;  %p3228_p5 = scmp.lt.u32.totalorder %s4346_s13, %s4406_s4 }
 0x30e   : > { %p3229_p6 = scmp.lt.u32.totalorder %s3227_s26, %s3223_s18  ;;  %p3231_p8 = scmp.lt.u32.totalorder %s3223_s18, %s4346_s13 }
 0x30f   : > { %p3225_p3 = pnand %p3224_p2, %p3382_p9 }
 0x310   : > { %p3230_p7 = por %p3229_p6, %p3228_p5 }
 0x311   : > { %p3226_p4 = pneg %p3225_p3 }
 0x312   : > { %p3232_p10 = por %p3231_p8, %p3230_p7 }
 0x314   : > { %p3233_p11 = pnand %p3232_p10, %p3226_p4 }
 0x316   : > { %3236 = shalt.err (!%p3233_p11)
}
 0x317   : > { %3086 = dma.vmem_to_hbm [thread:$0]  (%p3382_p9), %s4348_s30, 512, %s4346_s13, %s2785_s16, %s3311_s8, %s3311_s8, %s3312_s11  }
 0x318 PF: > { %p3096_p12 = scmp.ge.s32.totalorder %s3293_s24, 2  ;;  %s2831_s9 = sand.u32 1, %s3273_s20  }
 0x319   : > { %s2832_s10 = scalar_lea.sflag [#allocation7], %s2831_s9 }
 0x31a   : > { %p3090_p0 = pnand %p3096_p12, %p3389_p13 }
 0x31c   : > { %3264 = dma.done.wait (!%p3090_p0), %s2832_s10, 512  }
 0x31d   : > { %3266 = vsyncadd (!%p3090_p0), %s2832_s10, 4294966784  ;;  %s2841_s29 = scalar_lea.sflag [#allocation9], %s2831_s9 }
 0x31e   : > { %3268 = dma.done.wait (!%p3090_p0), %s2841_s29, 512  }
 0x31f   : > { %3270 = vsyncadd (!%p3090_p0), %s2841_s29, 4294966784  ;;  %s27_s24 = sadd.s32 1, %s3293_s24   ;;  %s4429_s20 = smov %s3277_s0 }
 0x320   : > { %p24_p1 = scmp.ge.s32.totalorder %s27_s24, 4   ;;  %s4430_s0 = smov %s3281_s21 }
 0x321   : > { %s4431_s21 = smov %s3395_s6  ;;  %s4432_s22 = smov %s3289_s23 }
 0x322   : > { %s4433_s23 = smov %s4435_s27  ;;  %26 = sbr.rel (!%p24_p1) target bundleno = 21 (0x15), region = 83 }
 0x329   :  { %2846 = vsyncpa [#allocation7], 1 }
 0x32a   :  { %2848 = vsyncpa [#allocation7 + $0x1], 1 }
 0x32b   :  { %2849 = vsyncpa [#allocation9], 1 }
 0x32c   :  { %2851 = vsyncpa [#allocation9 + $0x1], 1 }

</bundles_post_ra>
